<compile_context>
chip_gen: v7x
topology: tpu7x:2x2x1
jax: 0.10.0
libtpu: 0.0.40
codegen_flags: <defaults>
</compile_context>

<pallas_src>
import functools
import math

import jax
import jax.numpy as jnp
from jax.experimental import pallas as pl
from jax.experimental.pallas import tpu as pltpu

NEG_INF = -1e30  # finite stand-in for -inf key padding bias (exp(-1e30 - max) == 0)


# ---------------------------------------------------------------------------
# In-kernel helpers (operate on values, not refs)
# ---------------------------------------------------------------------------
def _layer_norm(x, gamma, beta, eps=1e-5):
    mean = jnp.mean(x, axis=-1, keepdims=True)
    cent = x - mean
    var = jnp.mean(cent * cent, axis=-1, keepdims=True)
    return cent * jax.lax.rsqrt(var + eps) * gamma + beta


def _encoder_layer(h2, bias, wq, bq, wk, bk, wv, bv, wo, bo,
                   g1, be1, w1, b1, w2, b2, g2, be2, B, S, H):
    """One post-norm nn.TransformerEncoderLayer (num_heads=1, ReLU FFN, eval mode).

    h2: (B*S, H) f32 activations.  wq/bq are pre-scaled by 1/sqrt(H).
    Matmul operands bf16, accumulation f32; LN/softmax in f32.
    """
    hb = h2.astype(jnp.bfloat16)
    q = jnp.dot(hb, wq, preferred_element_type=jnp.float32) + bq
    k = jnp.dot(hb, wk, preferred_element_type=jnp.float32) + bk
    v = jnp.dot(hb, wv, preferred_element_type=jnp.float32) + bv

    q3 = q.reshape(B, S, H).astype(jnp.bfloat16)
    k3 = k.reshape(B, S, H).astype(jnp.bfloat16)
    v3 = v.reshape(B, S, H).astype(jnp.bfloat16)

    scores = jnp.einsum("bqh,bkh->bqk", q3, k3,
                        preferred_element_type=jnp.float32) + bias   # (B,S,S)
    m = jnp.max(scores, axis=-1, keepdims=True)
    p = jnp.exp(scores - m)
    attn = p * pl.reciprocal(jnp.sum(p, axis=-1, keepdims=True), approx=True)

    ctx = jnp.einsum("bqk,bkh->bqh", attn.astype(jnp.bfloat16), v3,
                     preferred_element_type=jnp.float32)             # (B,S,H)
    attn_out = jnp.dot(ctx.reshape(B * S, H).astype(jnp.bfloat16), wo,
                       preferred_element_type=jnp.float32) + bo      # (B*S,H)

    hn = _layer_norm(h2 + attn_out, g1, be1)

    f = jnp.dot(hn.astype(jnp.bfloat16), w1,
                preferred_element_type=jnp.float32) + b1             # (B*S,2H)
    f = jnp.maximum(f, 0.0)
    f = jnp.dot(f.astype(jnp.bfloat16), w2,
                preferred_element_type=jnp.float32) + b2             # (B*S,H)
    return _layer_norm(hn + f, g2, be2)


# ---------------------------------------------------------------------------
# Fused kernel: one grid step == one head
# ---------------------------------------------------------------------------
def _fused_head_kernel(x_ref, bias_ref, ew_ref, eb_ref,
                       wq_ref, bq_ref, wk_ref, bk_ref, wv_ref, bv_ref,
                       wo_ref, bo_ref, g1_ref, be1_ref,
                       w1_ref, b1_ref, w2_ref, b2_ref, g2_ref, be2_ref,
                       wc_ref, bc_ref, out_ref, *,
                       num_layers, batch, seq, hidden):
    B, S, H = batch, seq, hidden
    x = x_ref[...]                         # (B, S, IN_PAD) f32
    bias = bias_ref[...]                   # (B, 1, S) f32, loaded once for all layers

    # embedding: collapse (B,S) -> single 2D MXU dot
    h = jnp.dot(x.reshape(B * S, -1).astype(jnp.bfloat16), ew_ref[...],
                preferred_element_type=jnp.float32) + eb_ref[...]    # (B*S, H)

    # static unroll over stacked [L, ...] per-layer weights (activations stay on-chip)
    for l in range(num_layers):
        h = _encoder_layer(h, bias,
                           wq_ref[l], bq_ref[l], wk_ref[l], bk_ref[l],
                           wv_ref[l], bv_ref[l], wo_ref[l], bo_ref[l],
                           g1_ref[l], be1_ref[l],
                           w1_ref[l], b1_ref[l], w2_ref[l], b2_ref[l],
                           g2_ref[l], be2_ref[l], B, S, H)

    # unmasked mean over seq, exactly like `x.mean(dim=1)` in the reference
    pooled = jnp.mean(h.reshape(B, S, H), axis=1)                    # (B, H)

    # this head's half of classifier: pooled @ Wc[h*H:(h+1)*H] (+ bc only on head 0,
    # concat folded into a split matmul; partials are summed outside)
    out_ref[...] = jnp.dot(pooled.astype(jnp.bfloat16), wc_ref[...],
                           preferred_element_type=jnp.float32) + bc_ref[...]


# ---------------------------------------------------------------------------
# Pallas wrapper
# ---------------------------------------------------------------------------
def _head_spec(tail_shape):
    """BlockSpec selecting one head from a (2, *tail_shape) stacked array."""
    tail = tuple(int(d) for d in tail_shape)
    zeros = (0,) * len(tail)
    return pl.BlockSpec((None,) + tail, lambda h: (h,) + zeros)


def two_head_forward(prepped, mcg_x, mcg_mask, atac_x, atac_mask):
    cfg = prepped["cfg"]
    B, S = mcg_x.shape[0], mcg_x.shape[1]
    H, L, O, IN_PAD = cfg["hidden"], cfg["layers"], cfg["out"], cfg["in_pad"]

    def pad_in(x):
        d = x.shape[-1]
        return x if d == IN_PAD else jnp.pad(x, ((0, 0), (0, 0), (0, IN_PAD - d)))

    x_st = jnp.stack([pad_in(mcg_x), pad_in(atac_x)]).astype(jnp.float32)  # (2,B,S,IN_PAD)
    # src_key_padding_mask = ~mask.bool()  -> additive bias, built once per call
    bias_st = jnp.stack([
        jnp.where(mcg_mask.astype(bool), 0.0, NEG_INF),
        jnp.where(atac_mask.astype(bool), 0.0, NEG_INF),
    ]).astype(jnp.float32)[:, :, None, :]                                   # (2,B,1,S)

    kern = functools.partial(_fused_head_kernel,
                             num_layers=L, batch=B, seq=S, hidden=H)

    args = (x_st, bias_st,
            prepped["ew"], prepped["eb"],
            prepped["wq"], prepped["bq"], prepped["wk"], prepped["bk"],
            prepped["wv"], prepped["bv"], prepped["wo"], prepped["bo"],
            prepped["g1"], prepped["be1"],
            prepped["w1"], prepped["b1"], prepped["w2"], prepped["b2"],
            prepped["g2"], prepped["be2"],
            prepped["wc"], prepped["bc"])

    partial_logits = pl.pallas_call(
        kern,
        out_shape=jax.ShapeDtypeStruct((2, B, O), jnp.float32),
        grid=(2,),                                   # one grid step per head
        in_specs=[_head_spec(a.shape[1:]) for a in args],
        out_specs=_head_spec((B, O)),
        compiler_params=pltpu.CompilerParams(
            dimension_semantics=("parallel",)),      # 2 TCs on v7x; serial elsewhere
    )(*args)

    # tiny (2,B,O) -> (B,O) combine of the two heads' classifier partials (glue add)
    return partial_logits[0] + partial_logits[1]


# ---------------------------------------------------------------------------
# One-time parameter preparation (stack per head/layer, split QKV, fold scale,
# zero-pad input dims to a common width, cast matmul weights to bf16)
# ---------------------------------------------------------------------------
def _round_up(n, m):
    return ((n + m - 1) // m) * m


def prepare_params(params, hidden, num_layers, out_dim):
    H = hidden
    scale = 1.0 / math.sqrt(H)
    in_pad = _round_up(max(params["mcg_emb_w"].shape[0],
                           params["atac_emb_w"].shape[0]), 16)

    def pad_w(w):
        return w if w.shape[0] == in_pad else jnp.pad(w, ((0, in_pad - w.shape[0]), (0, 0)))

    ew = jnp.stack([pad_w(params["mcg_emb_w"]),
                    pad_w(params["atac_emb_w"])]).astype(jnp.bfloat16)   # (2,IN_PAD,H)
    eb = jnp.stack([params["mcg_emb_b"], params["atac_emb_b"]])          # (2,1,H) f32

    def stack_layers(fn):
        return jnp.stack([
            jnp.stack([fn(params["mcg_layers"][l]) for l in range(num_layers)]),
            jnp.stack([fn(params["atac_layers"][l]) for l in range(num_layers)]),
        ])

    # split in_proj (H, 3H) [cols = Q|K|V, torch layout transposed] into lane-aligned
    # chunks; fold 1/sqrt(H) into Q.
    wq = stack_layers(lambda p: p["wqkv"][:, :H] * scale).astype(jnp.bfloat16)
    wk = stack_layers(lambda p: p["wqkv"][:, H:2 * H]).astype(jnp.bfloat16)
    wv = stack_layers(lambda p: p["wqkv"][:, 2 * H:]).astype(jnp.bfloat16)
    bq = stack_layers(lambda p: p["bqkv"][:, :H] * scale)
    bk = stack_layers(lambda p: p["bqkv"][:, H:2 * H])
    bv = stack_layers(lambda p: p["bqkv"][:, 2 * H:])
    wo = stack_layers(lambda p: p["wo"]).astype(jnp.bfloat16)
    bo = stack_layers(lambda p: p["bo"])
    w1 = stack_layers(lambda p: p["w1"]).astype(jnp.bfloat16)
    b1 = stack_layers(lambda p: p["b1"])
    w2 = stack_layers(lambda p: p["w2"]).astype(jnp.bfloat16)
    b2 = stack_layers(lambda p: p["b2"])
    g1 = stack_layers(lambda p: p["g1"])
    be1 = stack_layers(lambda p: p["be1"])
    g2 = stack_layers(lambda p: p["g2"])
    be2 = stack_layers(lambda p: p["be2"])

    wc = jnp.stack([params["cls_w"][:H], params["cls_w"][H:]]).astype(jnp.bfloat16)  # (2,H,O)
    bc = jnp.stack([params["cls_b"], jnp.zeros_like(params["cls_b"])])               # (2,1,O)

    return dict(cfg=dict(hidden=H, layers=num_layers, out=out_dim, in_pad=in_pad),
                ew=ew, eb=eb, wq=wq, bq=bq, wk=wk, bk=bk, wv=wv, bv=bv,
                wo=wo, bo=bo, g1=g1, be1=be1, w1=w1, b1=b1, w2=w2, b2=b2,
                g2=g2, be2=be2, wc=wc, bc=bc)


# ---------------------------------------------------------------------------
# Deterministic parameter init (shapes match the PyTorch __init__)
# ---------------------------------------------------------------------------
def _linear_init(key, fan_in, fan_out):
    kw, kb = jax.random.split(key)
    bound = 1.0 / math.sqrt(fan_in)
    w = jax.random.uniform(kw, (fan_in, fan_out), jnp.float32, -bound, bound)
    b = jax.random.uniform(kb, (1, fan_out), jnp.float32, -bound, bound)
    return w, b


def _encoder_layer_params(key, hidden):
    k = jax.random.split(key, 4)
    wqkv, bqkv = _linear_init(k[0], hidden, 3 * hidden)     # in_proj (Q|K|V)
    wo, bo = _linear_init(k[1], hidden, hidden)             # attn out_proj
    w1, b1 = _linear_init(k[2], hidden, 2 * hidden)         # FFN linear1 (dim_ff = 2H)
    w2, b2 = _linear_init(k[3], 2 * hidden, hidden)         # FFN linear2
    ones = jnp.ones((1, hidden), jnp.float32)
    zeros = jnp.zeros((1, hidden), jnp.float32)
    return dict(wqkv=wqkv, bqkv=bqkv, wo=wo, bo=bo,
                w1=w1, b1=b1, w2=w2, b2=b2,
                g1=ones, be1=zeros, g2=ones, be2=zeros)


def init_params(key, mcg_in, atac_in, hidden, out_dim, num_layers):
    k_me, k_ae, k_layer, k_cls = jax.random.split(key, 4)
    mcg_w, mcg_b = _linear_init(k_me, mcg_in, hidden)
    atac_w, atac_b = _linear_init(k_ae, atac_in, hidden)
    # PyTorch's TransformerEncoder deep-copies the SAME encoder_layers template
    # into every layer of both transformers -> all layers start identical.
    # (Kernel interface keeps general per-head/per-layer stacks so trained,
    #  diverged weights plug in unchanged.)
    layer_tpl = _encoder_layer_params(k_layer, hidden)
    cls_w, cls_b = _linear_init(k_cls, 2 * hidden, out_dim)
    return dict(
        mcg_emb_w=mcg_w, mcg_emb_b=mcg_b,
        atac_emb_w=atac_w, atac_emb_b=atac_b,
        mcg_layers=[layer_tpl] * num_layers,
        atac_layers=[layer_tpl] * num_layers,
        cls_w=cls_w, cls_b=cls_b,
    )


# ---------------------------------------------------------------------------
if __name__ == "__main__":
    B, S = 2, 8
    MCG_IN, ATAC_IN, HIDDEN, OUT, LAYERS = 12, 20, 32, 4, 2

    key = jax.random.PRNGKey(0)
    k_p, k_mcg, k_atac = jax.random.split(key, 3)
    params = init_params(k_p, MCG_IN, ATAC_IN, HIDDEN, OUT, LAYERS)
    prepped = prepare_params(params, HIDDEN, LAYERS, OUT)

    mcg_x = jax.random.normal(k_mcg, (B, S, MCG_IN), jnp.float32)
    atac_x = jax.random.normal(k_atac, (B, S, ATAC_IN), jnp.float32)
    # valid (1) / padding (0) masks, as in the PyTorch call site
    mcg_mask = jnp.array([[1] * 8, [1] * 5 + [0] * 3], dtype=jnp.int32)
    atac_mask = jnp.array([[1] * 6 + [0] * 2, [1] * 8], dtype=jnp.int32)

    fwd = jax.jit(functools.partial(two_head_forward, prepped))
    out = jax.block_until_ready(fwd(mcg_x, mcg_mask, atac_x, atac_mask))

    assert out.shape == (B, OUT), out.shape
    assert bool(jnp.all(jnp.isfinite(out)))
    print("KERNEL_OK")
</pallas_src>

<mosaic_0001>
module attributes {stable_mosaic.version = 11 : i64} {
  func.func @_fused_head_kernel(%arg0: i32, %arg1: memref<1x2x8x32xf32, #tpu.memory_space<vmem>>, %arg2: memref<1x2x1x8xf32, #tpu.memory_space<vmem>>, %arg3: memref<1x32x32xbf16, #tpu.memory_space<vmem>>, %arg4: memref<1x1x32xf32, #tpu.memory_space<vmem>>, %arg5: memref<1x2x32x32xbf16, #tpu.memory_space<vmem>>, %arg6: memref<1x2x1x32xf32, #tpu.memory_space<vmem>>, %arg7: memref<1x2x32x32xbf16, #tpu.memory_space<vmem>>, %arg8: memref<1x2x1x32xf32, #tpu.memory_space<vmem>>, %arg9: memref<1x2x32x32xbf16, #tpu.memory_space<vmem>>, %arg10: memref<1x2x1x32xf32, #tpu.memory_space<vmem>>, %arg11: memref<1x2x32x32xbf16, #tpu.memory_space<vmem>>, %arg12: memref<1x2x1x32xf32, #tpu.memory_space<vmem>>, %arg13: memref<1x2x1x32xf32, #tpu.memory_space<vmem>>, %arg14: memref<1x2x1x32xf32, #tpu.memory_space<vmem>>, %arg15: memref<1x2x32x64xbf16, #tpu.memory_space<vmem>>, %arg16: memref<1x2x1x64xf32, #tpu.memory_space<vmem>>, %arg17: memref<1x2x64x32xbf16, #tpu.memory_space<vmem>>, %arg18: memref<1x2x1x32xf32, #tpu.memory_space<vmem>>, %arg19: memref<1x2x1x32xf32, #tpu.memory_space<vmem>>, %arg20: memref<1x2x1x32xf32, #tpu.memory_space<vmem>>, %arg21: memref<1x32x4xbf16, #tpu.memory_space<vmem>>, %arg22: memref<1x1x4xf32, #tpu.memory_space<vmem>>, %arg23: memref<1x2x4xf32, #tpu.memory_space<vmem>>) attributes {dimension_semantics = [#tpu.dimension_semantics<parallel>], iteration_bounds = array<i64: 2>, scalar_prefetch = 0 : i64, scratch_operands = 0 : i64, tpu.core_type = #tpu.core_type<tc>, window_params = [{transform_indices = @transform_0, window_bounds = array<i64: 1, 2, 8, 32>}, {transform_indices = @transform_1, window_bounds = array<i64: 1, 2, 1, 8>}, {transform_indices = @transform_2, window_bounds = array<i64: 1, 32, 32>}, {transform_indices = @transform_3, window_bounds = array<i64: 1, 1, 32>}, {transform_indices = @transform_4, window_bounds = array<i64: 1, 2, 32, 32>}, {transform_indices = @transform_5, window_bounds = array<i64: 1, 2, 1, 32>}, {transform_indices = @transform_6, window_bounds = array<i64: 1, 2, 32, 32>}, {transform_indices = @transform_7, window_bounds = array<i64: 1, 2, 1, 32>}, {transform_indices = @transform_8, window_bounds = array<i64: 1, 2, 32, 32>}, {transform_indices = @transform_9, window_bounds = array<i64: 1, 2, 1, 32>}, {transform_indices = @transform_10, window_bounds = array<i64: 1, 2, 32, 32>}, {transform_indices = @transform_11, window_bounds = array<i64: 1, 2, 1, 32>}, {transform_indices = @transform_12, window_bounds = array<i64: 1, 2, 1, 32>}, {transform_indices = @transform_13, window_bounds = array<i64: 1, 2, 1, 32>}, {transform_indices = @transform_14, window_bounds = array<i64: 1, 2, 32, 64>}, {transform_indices = @transform_15, window_bounds = array<i64: 1, 2, 1, 64>}, {transform_indices = @transform_16, window_bounds = array<i64: 1, 2, 64, 32>}, {transform_indices = @transform_17, window_bounds = array<i64: 1, 2, 1, 32>}, {transform_indices = @transform_18, window_bounds = array<i64: 1, 2, 1, 32>}, {transform_indices = @transform_19, window_bounds = array<i64: 1, 2, 1, 32>}, {transform_indices = @transform_20, window_bounds = array<i64: 1, 32, 4>}, {transform_indices = @transform_21, window_bounds = array<i64: 1, 1, 4>}, {transform_indices = @transform_22, window_bounds = array<i64: 1, 2, 4>}]} {
    %c0 = arith.constant 0 : index
    %c0_0 = arith.constant 0 : index
    %c0_1 = arith.constant 0 : index
    %c0_2 = arith.constant 0 : index
    %0 = vector.load %arg1[%c0, %c0_0, %c0_1, %c0_2] : memref<1x2x8x32xf32, #tpu.memory_space<vmem>>, vector<1x2x8x32xf32>
    %1 = vector.shape_cast %0 : vector<1x2x8x32xf32> to vector<2x8x32xf32>
    %c0_3 = arith.constant 0 : index
    %c0_4 = arith.constant 0 : index
    %c0_5 = arith.constant 0 : index
    %c0_6 = arith.constant 0 : index
    %2 = vector.load %arg2[%c0_3, %c0_4, %c0_5, %c0_6] : memref<1x2x1x8xf32, #tpu.memory_space<vmem>>, vector<1x2x1x8xf32>
    %3 = vector.shape_cast %2 : vector<1x2x1x8xf32> to vector<2x1x8xf32>
    %4 = vector.shape_cast %1 : vector<2x8x32xf32> to vector<16x32xf32>
    %5 = arith.truncf %4 : vector<16x32xf32> to vector<16x32xbf16>
    %c0_7 = arith.constant 0 : index
    %c0_8 = arith.constant 0 : index
    %c0_9 = arith.constant 0 : index
    %6 = vector.load %arg3[%c0_7, %c0_8, %c0_9] : memref<1x32x32xbf16, #tpu.memory_space<vmem>>, vector<1x32x32xbf16>
    %7 = vector.shape_cast %6 : vector<1x32x32xbf16> to vector<32x32xbf16>
    %cst = arith.constant dense<0.000000e+00> : vector<16x32xf32>
    %8 = tpu.matmul %5, %7, %cst {dimension_numbers = #tpu.dot_dimension_numbers<[1], [0], [0], [1], [0, 0, 1, 1], [], []>} : vector<16x32xbf16>, vector<32x32xbf16>, vector<16x32xf32> -> vector<16x32xf32>
    %c0_10 = arith.constant 0 : index
    %c0_11 = arith.constant 0 : index
    %c0_12 = arith.constant 0 : index
    %9 = vector.load %arg4[%c0_10, %c0_11, %c0_12] : memref<1x1x32xf32, #tpu.memory_space<vmem>>, vector<1x1x32xf32>
    %10 = vector.shape_cast %9 : vector<1x1x32xf32> to vector<1x32xf32>
    %11 = vector.broadcast %10 : vector<1x32xf32> to vector<16x32xf32>
    %12 = arith.addf %8, %11 : vector<16x32xf32>
    %c0_13 = arith.constant 0 : index
    %c0_14 = arith.constant 0 : index
    %c0_15 = arith.constant 0 : index
    %c0_16 = arith.constant 0 : index
    %13 = vector.load %arg5[%c0_13, %c0_14, %c0_15, %c0_16] : memref<1x2x32x32xbf16, #tpu.memory_space<vmem>>, vector<1x1x32x32xbf16>
    %14 = vector.shape_cast %13 : vector<1x1x32x32xbf16> to vector<32x32xbf16>
    %c0_17 = arith.constant 0 : index
    %c0_18 = arith.constant 0 : index
    %c0_19 = arith.constant 0 : index
    %c0_20 = arith.constant 0 : index
    %15 = vector.load %arg6[%c0_17, %c0_18, %c0_19, %c0_20] : memref<1x2x1x32xf32, #tpu.memory_space<vmem>>, vector<1x1x1x32xf32>
    %16 = vector.shape_cast %15 : vector<1x1x1x32xf32> to vector<1x32xf32>
    %c0_21 = arith.constant 0 : index
    %c0_22 = arith.constant 0 : index
    %c0_23 = arith.constant 0 : index
    %c0_24 = arith.constant 0 : index
    %17 = vector.load %arg7[%c0_21, %c0_22, %c0_23, %c0_24] : memref<1x2x32x32xbf16, #tpu.memory_space<vmem>>, vector<1x1x32x32xbf16>
    %18 = vector.shape_cast %17 : vector<1x1x32x32xbf16> to vector<32x32xbf16>
    %c0_25 = arith.constant 0 : index
    %c0_26 = arith.constant 0 : index
    %c0_27 = arith.constant 0 : index
    %c0_28 = arith.constant 0 : index
    %19 = vector.load %arg8[%c0_25, %c0_26, %c0_27, %c0_28] : memref<1x2x1x32xf32, #tpu.memory_space<vmem>>, vector<1x1x1x32xf32>
    %20 = vector.shape_cast %19 : vector<1x1x1x32xf32> to vector<1x32xf32>
    %c0_29 = arith.constant 0 : index
    %c0_30 = arith.constant 0 : index
    %c0_31 = arith.constant 0 : index
    %c0_32 = arith.constant 0 : index
    %21 = vector.load %arg9[%c0_29, %c0_30, %c0_31, %c0_32] : memref<1x2x32x32xbf16, #tpu.memory_space<vmem>>, vector<1x1x32x32xbf16>
    %22 = vector.shape_cast %21 : vector<1x1x32x32xbf16> to vector<32x32xbf16>
    %c0_33 = arith.constant 0 : index
    %c0_34 = arith.constant 0 : index
    %c0_35 = arith.constant 0 : index
    %c0_36 = arith.constant 0 : index
    %23 = vector.load %arg10[%c0_33, %c0_34, %c0_35, %c0_36] : memref<1x2x1x32xf32, #tpu.memory_space<vmem>>, vector<1x1x1x32xf32>
    %24 = vector.shape_cast %23 : vector<1x1x1x32xf32> to vector<1x32xf32>
    %c0_37 = arith.constant 0 : index
    %c0_38 = arith.constant 0 : index
    %c0_39 = arith.constant 0 : index
    %c0_40 = arith.constant 0 : index
    %25 = vector.load %arg11[%c0_37, %c0_38, %c0_39, %c0_40] : memref<1x2x32x32xbf16, #tpu.memory_space<vmem>>, vector<1x1x32x32xbf16>
    %26 = vector.shape_cast %25 : vector<1x1x32x32xbf16> to vector<32x32xbf16>
    %c0_41 = arith.constant 0 : index
    %c0_42 = arith.constant 0 : index
    %c0_43 = arith.constant 0 : index
    %c0_44 = arith.constant 0 : index
    %27 = vector.load %arg12[%c0_41, %c0_42, %c0_43, %c0_44] : memref<1x2x1x32xf32, #tpu.memory_space<vmem>>, vector<1x1x1x32xf32>
    %28 = vector.shape_cast %27 : vector<1x1x1x32xf32> to vector<1x32xf32>
    %c0_45 = arith.constant 0 : index
    %c0_46 = arith.constant 0 : index
    %c0_47 = arith.constant 0 : index
    %c0_48 = arith.constant 0 : index
    %29 = vector.load %arg13[%c0_45, %c0_46, %c0_47, %c0_48] : memref<1x2x1x32xf32, #tpu.memory_space<vmem>>, vector<1x1x1x32xf32>
    %30 = vector.shape_cast %29 : vector<1x1x1x32xf32> to vector<1x32xf32>
    %c0_49 = arith.constant 0 : index
    %c0_50 = arith.constant 0 : index
    %c0_51 = arith.constant 0 : index
    %c0_52 = arith.constant 0 : index
    %31 = vector.load %arg14[%c0_49, %c0_50, %c0_51, %c0_52] : memref<1x2x1x32xf32, #tpu.memory_space<vmem>>, vector<1x1x1x32xf32>
    %32 = vector.shape_cast %31 : vector<1x1x1x32xf32> to vector<1x32xf32>
    %c0_53 = arith.constant 0 : index
    %c0_54 = arith.constant 0 : index
    %c0_55 = arith.constant 0 : index
    %c0_56 = arith.constant 0 : index
    %33 = vector.load %arg15[%c0_53, %c0_54, %c0_55, %c0_56] : memref<1x2x32x64xbf16, #tpu.memory_space<vmem>>, vector<1x1x32x64xbf16>
    %34 = vector.shape_cast %33 : vector<1x1x32x64xbf16> to vector<32x64xbf16>
    %c0_57 = arith.constant 0 : index
    %c0_58 = arith.constant 0 : index
    %c0_59 = arith.constant 0 : index
    %c0_60 = arith.constant 0 : index
    %35 = vector.load %arg16[%c0_57, %c0_58, %c0_59, %c0_60] : memref<1x2x1x64xf32, #tpu.memory_space<vmem>>, vector<1x1x1x64xf32>
    %36 = vector.shape_cast %35 : vector<1x1x1x64xf32> to vector<1x64xf32>
    %c0_61 = arith.constant 0 : index
    %c0_62 = arith.constant 0 : index
    %c0_63 = arith.constant 0 : index
    %c0_64 = arith.constant 0 : index
    %37 = vector.load %arg17[%c0_61, %c0_62, %c0_63, %c0_64] : memref<1x2x64x32xbf16, #tpu.memory_space<vmem>>, vector<1x1x64x32xbf16>
    %38 = vector.shape_cast %37 : vector<1x1x64x32xbf16> to vector<64x32xbf16>
    %c0_65 = arith.constant 0 : index
    %c0_66 = arith.constant 0 : index
    %c0_67 = arith.constant 0 : index
    %c0_68 = arith.constant 0 : index
    %39 = vector.load %arg18[%c0_65, %c0_66, %c0_67, %c0_68] : memref<1x2x1x32xf32, #tpu.memory_space<vmem>>, vector<1x1x1x32xf32>
    %40 = vector.shape_cast %39 : vector<1x1x1x32xf32> to vector<1x32xf32>
    %c0_69 = arith.constant 0 : index
    %c0_70 = arith.constant 0 : index
    %c0_71 = arith.constant 0 : index
    %c0_72 = arith.constant 0 : index
    %41 = vector.load %arg19[%c0_69, %c0_70, %c0_71, %c0_72] : memref<1x2x1x32xf32, #tpu.memory_space<vmem>>, vector<1x1x1x32xf32>
    %42 = vector.shape_cast %41 : vector<1x1x1x32xf32> to vector<1x32xf32>
    %c0_73 = arith.constant 0 : index
    %c0_74 = arith.constant 0 : index
    %c0_75 = arith.constant 0 : index
    %c0_76 = arith.constant 0 : index
    %43 = vector.load %arg20[%c0_73, %c0_74, %c0_75, %c0_76] : memref<1x2x1x32xf32, #tpu.memory_space<vmem>>, vector<1x1x1x32xf32>
    %44 = vector.shape_cast %43 : vector<1x1x1x32xf32> to vector<1x32xf32>
    %45 = arith.truncf %12 : vector<16x32xf32> to vector<16x32xbf16>
    %cst_77 = arith.constant dense<0.000000e+00> : vector<16x32xf32>
    %46 = tpu.matmul %45, %14, %cst_77 {dimension_numbers = #tpu.dot_dimension_numbers<[1], [0], [0], [1], [0, 0, 1, 1], [], []>} : vector<16x32xbf16>, vector<32x32xbf16>, vector<16x32xf32> -> vector<16x32xf32>
    %47 = vector.broadcast %16 : vector<1x32xf32> to vector<16x32xf32>
    %48 = arith.addf %46, %47 : vector<16x32xf32>
    %cst_78 = arith.constant dense<0.000000e+00> : vector<16x32xf32>
    %49 = tpu.matmul %45, %18, %cst_78 {dimension_numbers = #tpu.dot_dimension_numbers<[1], [0], [0], [1], [0, 0, 1, 1], [], []>} : vector<16x32xbf16>, vector<32x32xbf16>, vector<16x32xf32> -> vector<16x32xf32>
    %50 = vector.broadcast %20 : vector<1x32xf32> to vector<16x32xf32>
    %51 = arith.addf %49, %50 : vector<16x32xf32>
    %cst_79 = arith.constant dense<0.000000e+00> : vector<16x32xf32>
    %52 = tpu.matmul %45, %22, %cst_79 {dimension_numbers = #tpu.dot_dimension_numbers<[1], [0], [0], [1], [0, 0, 1, 1], [], []>} : vector<16x32xbf16>, vector<32x32xbf16>, vector<16x32xf32> -> vector<16x32xf32>
    %53 = vector.broadcast %24 : vector<1x32xf32> to vector<16x32xf32>
    %54 = arith.addf %52, %53 : vector<16x32xf32>
    %55 = vector.shape_cast %48 : vector<16x32xf32> to vector<2x8x32xf32>
    %56 = arith.truncf %55 : vector<2x8x32xf32> to vector<2x8x32xbf16>
    %57 = vector.shape_cast %51 : vector<16x32xf32> to vector<2x8x32xf32>
    %58 = arith.truncf %57 : vector<2x8x32xf32> to vector<2x8x32xbf16>
    %59 = vector.shape_cast %54 : vector<16x32xf32> to vector<2x8x32xf32>
    %60 = arith.truncf %59 : vector<2x8x32xf32> to vector<2x8x32xbf16>
    "tpu.trace_start"() <{level = 10 : i32, message = "bqh,bkh->bqk"}> : () -> ()
    %cst_80 = arith.constant dense<0.000000e+00> : vector<2x8x8xf32>
    %61 = tpu.matmul %56, %58, %cst_80 {dimension_numbers = #tpu.dot_dimension_numbers<[2], [2], [1], [1], [0, 0, 0, 1, 1, 1], [0], [0]>} : vector<2x8x32xbf16>, vector<2x8x32xbf16>, vector<2x8x8xf32> -> vector<2x8x8xf32>
    "tpu.trace_stop"() : () -> ()
    %62 = vector.broadcast %3 : vector<2x1x8xf32> to vector<2x8x8xf32>
    %63 = arith.addf %61, %62 : vector<2x8x8xf32>
    %cst_81 = arith.constant dense<0xFF800000> : vector<2x8xf32>
    %64 = vector.multi_reduction <maximumf>, %63, %cst_81 [2] : vector<2x8x8xf32> to vector<2x8xf32>
    %65 = vector.shape_cast %64 : vector<2x8xf32> to vector<2x8x1xf32>
    %66 = vector.broadcast %65 : vector<2x8x1xf32> to vector<2x8x8xf32>
    %67 = arith.subf %63, %66 : vector<2x8x8xf32>
    %68 = math.exp %67 : vector<2x8x8xf32>
    %cst_82 = arith.constant dense<0.000000e+00> : vector<2x8xf32>
    %69 = vector.multi_reduction <add>, %68, %cst_82 [2] : vector<2x8x8xf32> to vector<2x8xf32>
    %70 = vector.shape_cast %69 : vector<2x8xf32> to vector<2x8x1xf32>
    %71 = tpu.reciprocal %70 {approx = true} : vector<2x8x1xf32> -> vector<2x8x1xf32>
    %72 = vector.broadcast %71 : vector<2x8x1xf32> to vector<2x8x8xf32>
    %73 = arith.mulf %68, %72 : vector<2x8x8xf32>
    %74 = arith.truncf %73 : vector<2x8x8xf32> to vector<2x8x8xbf16>
    "tpu.trace_start"() <{level = 10 : i32, message = "bqk,bkh->bqh"}> : () -> ()
    %cst_83 = arith.constant dense<0.000000e+00> : vector<2x8x32xf32>
    %75 = tpu.matmul %74, %60, %cst_83 {dimension_numbers = #tpu.dot_dimension_numbers<[2], [1], [1], [2], [0, 0, 0, 1, 1, 2], [0], [0]>} : vector<2x8x8xbf16>, vector<2x8x32xbf16>, vector<2x8x32xf32> -> vector<2x8x32xf32>
    "tpu.trace_stop"() : () -> ()
    %76 = vector.shape_cast %75 : vector<2x8x32xf32> to vector<16x32xf32>
    %77 = arith.truncf %76 : vector<16x32xf32> to vector<16x32xbf16>
    %cst_84 = arith.constant dense<0.000000e+00> : vector<16x32xf32>
    %78 = tpu.matmul %77, %26, %cst_84 {dimension_numbers = #tpu.dot_dimension_numbers<[1], [0], [0], [1], [0, 0, 1, 1], [], []>} : vector<16x32xbf16>, vector<32x32xbf16>, vector<16x32xf32> -> vector<16x32xf32>
    %79 = vector.broadcast %28 : vector<1x32xf32> to vector<16x32xf32>
    %80 = arith.addf %78, %79 : vector<16x32xf32>
    %81 = arith.addf %12, %80 : vector<16x32xf32>
    %cst_85 = arith.constant dense<0.000000e+00> : vector<16xf32>
    %82 = vector.multi_reduction <add>, %81, %cst_85 [1] : vector<16x32xf32> to vector<16xf32>
    %83 = vector.shape_cast %82 : vector<16xf32> to vector<16x1xf32>
    %cst_86 = arith.constant 3.200000e+01 : f32
    %84 = vector.broadcast %cst_86 : f32 to vector<16x1xf32>
    %85 = arith.divf %83, %84 : vector<16x1xf32>
    %86 = vector.broadcast %85 : vector<16x1xf32> to vector<16x32xf32>
    %87 = arith.subf %81, %86 : vector<16x32xf32>
    %88 = arith.mulf %87, %87 : vector<16x32xf32>
    %cst_87 = arith.constant dense<0.000000e+00> : vector<16xf32>
    %89 = vector.multi_reduction <add>, %88, %cst_87 [1] : vector<16x32xf32> to vector<16xf32>
    %90 = vector.shape_cast %89 : vector<16xf32> to vector<16x1xf32>
    %cst_88 = arith.constant 3.200000e+01 : f32
    %91 = vector.broadcast %cst_88 : f32 to vector<16x1xf32>
    %92 = arith.divf %90, %91 : vector<16x1xf32>
    %cst_89 = arith.constant 9.99999974E-6 : f32
    %93 = vector.broadcast %cst_89 : f32 to vector<16x1xf32>
    %94 = arith.addf %92, %93 : vector<16x1xf32>
    %95 = math.rsqrt %94 : vector<16x1xf32>
    %96 = vector.broadcast %95 : vector<16x1xf32> to vector<16x32xf32>
    %97 = arith.mulf %87, %96 : vector<16x32xf32>
    %98 = vector.broadcast %30 : vector<1x32xf32> to vector<16x32xf32>
    %99 = arith.mulf %97, %98 : vector<16x32xf32>
    %100 = vector.broadcast %32 : vector<1x32xf32> to vector<16x32xf32>
    %101 = arith.addf %99, %100 : vector<16x32xf32>
    %102 = arith.truncf %101 : vector<16x32xf32> to vector<16x32xbf16>
    %cst_90 = arith.constant dense<0.000000e+00> : vector<16x64xf32>
    %103 = tpu.matmul %102, %34, %cst_90 {dimension_numbers = #tpu.dot_dimension_numbers<[1], [0], [0], [1], [0, 0, 1, 1], [], []>} : vector<16x32xbf16>, vector<32x64xbf16>, vector<16x64xf32> -> vector<16x64xf32>
    %104 = vector.broadcast %36 : vector<1x64xf32> to vector<16x64xf32>
    %105 = arith.addf %103, %104 : vector<16x64xf32>
    %cst_91 = arith.constant 0.000000e+00 : f32
    %106 = vector.broadcast %cst_91 : f32 to vector<16x64xf32>
    %107 = arith.maximumf %105, %106 : vector<16x64xf32>
    %108 = arith.truncf %107 : vector<16x64xf32> to vector<16x64xbf16>
    %cst_92 = arith.constant dense<0.000000e+00> : vector<16x32xf32>
    %109 = tpu.matmul %108, %38, %cst_92 {dimension_numbers = #tpu.dot_dimension_numbers<[1], [0], [0], [1], [0, 0, 1, 1], [], []>} : vector<16x64xbf16>, vector<64x32xbf16>, vector<16x32xf32> -> vector<16x32xf32>
    %110 = vector.broadcast %40 : vector<1x32xf32> to vector<16x32xf32>
    %111 = arith.addf %109, %110 : vector<16x32xf32>
    %112 = arith.addf %101, %111 : vector<16x32xf32>
    %cst_93 = arith.constant dense<0.000000e+00> : vector<16xf32>
    %113 = vector.multi_reduction <add>, %112, %cst_93 [1] : vector<16x32xf32> to vector<16xf32>
    %114 = vector.shape_cast %113 : vector<16xf32> to vector<16x1xf32>
    %cst_94 = arith.constant 3.200000e+01 : f32
    %115 = vector.broadcast %cst_94 : f32 to vector<16x1xf32>
    %116 = arith.divf %114, %115 : vector<16x1xf32>
    %117 = vector.broadcast %116 : vector<16x1xf32> to vector<16x32xf32>
    %118 = arith.subf %112, %117 : vector<16x32xf32>
    %119 = arith.mulf %118, %118 : vector<16x32xf32>
    %cst_95 = arith.constant dense<0.000000e+00> : vector<16xf32>
    %120 = vector.multi_reduction <add>, %119, %cst_95 [1] : vector<16x32xf32> to vector<16xf32>
    %121 = vector.shape_cast %120 : vector<16xf32> to vector<16x1xf32>
    %cst_96 = arith.constant 3.200000e+01 : f32
    %122 = vector.broadcast %cst_96 : f32 to vector<16x1xf32>
    %123 = arith.divf %121, %122 : vector<16x1xf32>
    %cst_97 = arith.constant 9.99999974E-6 : f32
    %124 = vector.broadcast %cst_97 : f32 to vector<16x1xf32>
    %125 = arith.addf %123, %124 : vector<16x1xf32>
    %126 = math.rsqrt %125 : vector<16x1xf32>
    %127 = vector.broadcast %126 : vector<16x1xf32> to vector<16x32xf32>
    %128 = arith.mulf %118, %127 : vector<16x32xf32>
    %129 = vector.broadcast %42 : vector<1x32xf32> to vector<16x32xf32>
    %130 = arith.mulf %128, %129 : vector<16x32xf32>
    %131 = vector.broadcast %44 : vector<1x32xf32> to vector<16x32xf32>
    %132 = arith.addf %130, %131 : vector<16x32xf32>
    %c0_98 = arith.constant 0 : index
    %c1 = arith.constant 1 : index
    %c0_99 = arith.constant 0 : index
    %c0_100 = arith.constant 0 : index
    %133 = vector.load %arg5[%c0_98, %c1, %c0_99, %c0_100] : memref<1x2x32x32xbf16, #tpu.memory_space<vmem>>, vector<1x1x32x32xbf16>
    %134 = vector.shape_cast %133 : vector<1x1x32x32xbf16> to vector<32x32xbf16>
    %c0_101 = arith.constant 0 : index
    %c1_102 = arith.constant 1 : index
    %c0_103 = arith.constant 0 : index
    %c0_104 = arith.constant 0 : index
    %135 = vector.load %arg6[%c0_101, %c1_102, %c0_103, %c0_104] : memref<1x2x1x32xf32, #tpu.memory_space<vmem>>, vector<1x1x1x32xf32>
    %136 = vector.shape_cast %135 : vector<1x1x1x32xf32> to vector<1x32xf32>
    %c0_105 = arith.constant 0 : index
    %c1_106 = arith.constant 1 : index
    %c0_107 = arith.constant 0 : index
    %c0_108 = arith.constant 0 : index
    %137 = vector.load %arg7[%c0_105, %c1_106, %c0_107, %c0_108] : memref<1x2x32x32xbf16, #tpu.memory_space<vmem>>, vector<1x1x32x32xbf16>
    %138 = vector.shape_cast %137 : vector<1x1x32x32xbf16> to vector<32x32xbf16>
    %c0_109 = arith.constant 0 : index
    %c1_110 = arith.constant 1 : index
    %c0_111 = arith.constant 0 : index
    %c0_112 = arith.constant 0 : index
    %139 = vector.load %arg8[%c0_109, %c1_110, %c0_111, %c0_112] : memref<1x2x1x32xf32, #tpu.memory_space<vmem>>, vector<1x1x1x32xf32>
    %140 = vector.shape_cast %139 : vector<1x1x1x32xf32> to vector<1x32xf32>
    %c0_113 = arith.constant 0 : index
    %c1_114 = arith.constant 1 : index
    %c0_115 = arith.constant 0 : index
    %c0_116 = arith.constant 0 : index
    %141 = vector.load %arg9[%c0_113, %c1_114, %c0_115, %c0_116] : memref<1x2x32x32xbf16, #tpu.memory_space<vmem>>, vector<1x1x32x32xbf16>
    %142 = vector.shape_cast %141 : vector<1x1x32x32xbf16> to vector<32x32xbf16>
    %c0_117 = arith.constant 0 : index
    %c1_118 = arith.constant 1 : index
    %c0_119 = arith.constant 0 : index
    %c0_120 = arith.constant 0 : index
    %143 = vector.load %arg10[%c0_117, %c1_118, %c0_119, %c0_120] : memref<1x2x1x32xf32, #tpu.memory_space<vmem>>, vector<1x1x1x32xf32>
    %144 = vector.shape_cast %143 : vector<1x1x1x32xf32> to vector<1x32xf32>
    %c0_121 = arith.constant 0 : index
    %c1_122 = arith.constant 1 : index
    %c0_123 = arith.constant 0 : index
    %c0_124 = arith.constant 0 : index
    %145 = vector.load %arg11[%c0_121, %c1_122, %c0_123, %c0_124] : memref<1x2x32x32xbf16, #tpu.memory_space<vmem>>, vector<1x1x32x32xbf16>
    %146 = vector.shape_cast %145 : vector<1x1x32x32xbf16> to vector<32x32xbf16>
    %c0_125 = arith.constant 0 : index
    %c1_126 = arith.constant 1 : index
    %c0_127 = arith.constant 0 : index
    %c0_128 = arith.constant 0 : index
    %147 = vector.load %arg12[%c0_125, %c1_126, %c0_127, %c0_128] : memref<1x2x1x32xf32, #tpu.memory_space<vmem>>, vector<1x1x1x32xf32>
    %148 = vector.shape_cast %147 : vector<1x1x1x32xf32> to vector<1x32xf32>
    %c0_129 = arith.constant 0 : index
    %c1_130 = arith.constant 1 : index
    %c0_131 = arith.constant 0 : index
    %c0_132 = arith.constant 0 : index
    %149 = vector.load %arg13[%c0_129, %c1_130, %c0_131, %c0_132] : memref<1x2x1x32xf32, #tpu.memory_space<vmem>>, vector<1x1x1x32xf32>
    %150 = vector.shape_cast %149 : vector<1x1x1x32xf32> to vector<1x32xf32>
    %c0_133 = arith.constant 0 : index
    %c1_134 = arith.constant 1 : index
    %c0_135 = arith.constant 0 : index
    %c0_136 = arith.constant 0 : index
    %151 = vector.load %arg14[%c0_133, %c1_134, %c0_135, %c0_136] : memref<1x2x1x32xf32, #tpu.memory_space<vmem>>, vector<1x1x1x32xf32>
    %152 = vector.shape_cast %151 : vector<1x1x1x32xf32> to vector<1x32xf32>
    %c0_137 = arith.constant 0 : index
    %c1_138 = arith.constant 1 : index
    %c0_139 = arith.constant 0 : index
    %c0_140 = arith.constant 0 : index
    %153 = vector.load %arg15[%c0_137, %c1_138, %c0_139, %c0_140] : memref<1x2x32x64xbf16, #tpu.memory_space<vmem>>, vector<1x1x32x64xbf16>
    %154 = vector.shape_cast %153 : vector<1x1x32x64xbf16> to vector<32x64xbf16>
    %c0_141 = arith.constant 0 : index
    %c1_142 = arith.constant 1 : index
    %c0_143 = arith.constant 0 : index
    %c0_144 = arith.constant 0 : index
    %155 = vector.load %arg16[%c0_141, %c1_142, %c0_143, %c0_144] : memref<1x2x1x64xf32, #tpu.memory_space<vmem>>, vector<1x1x1x64xf32>
    %156 = vector.shape_cast %155 : vector<1x1x1x64xf32> to vector<1x64xf32>
    %c0_145 = arith.constant 0 : index
    %c1_146 = arith.constant 1 : index
    %c0_147 = arith.constant 0 : index
    %c0_148 = arith.constant 0 : index
    %157 = vector.load %arg17[%c0_145, %c1_146, %c0_147, %c0_148] : memref<1x2x64x32xbf16, #tpu.memory_space<vmem>>, vector<1x1x64x32xbf16>
    %158 = vector.shape_cast %157 : vector<1x1x64x32xbf16> to vector<64x32xbf16>
    %c0_149 = arith.constant 0 : index
    %c1_150 = arith.constant 1 : index
    %c0_151 = arith.constant 0 : index
    %c0_152 = arith.constant 0 : index
    %159 = vector.load %arg18[%c0_149, %c1_150, %c0_151, %c0_152] : memref<1x2x1x32xf32, #tpu.memory_space<vmem>>, vector<1x1x1x32xf32>
    %160 = vector.shape_cast %159 : vector<1x1x1x32xf32> to vector<1x32xf32>
    %c0_153 = arith.constant 0 : index
    %c1_154 = arith.constant 1 : index
    %c0_155 = arith.constant 0 : index
    %c0_156 = arith.constant 0 : index
    %161 = vector.load %arg19[%c0_153, %c1_154, %c0_155, %c0_156] : memref<1x2x1x32xf32, #tpu.memory_space<vmem>>, vector<1x1x1x32xf32>
    %162 = vector.shape_cast %161 : vector<1x1x1x32xf32> to vector<1x32xf32>
    %c0_157 = arith.constant 0 : index
    %c1_158 = arith.constant 1 : index
    %c0_159 = arith.constant 0 : index
    %c0_160 = arith.constant 0 : index
    %163 = vector.load %arg20[%c0_157, %c1_158, %c0_159, %c0_160] : memref<1x2x1x32xf32, #tpu.memory_space<vmem>>, vector<1x1x1x32xf32>
    %164 = vector.shape_cast %163 : vector<1x1x1x32xf32> to vector<1x32xf32>
    %165 = arith.truncf %132 : vector<16x32xf32> to vector<16x32xbf16>
    %cst_161 = arith.constant dense<0.000000e+00> : vector<16x32xf32>
    %166 = tpu.matmul %165, %134, %cst_161 {dimension_numbers = #tpu.dot_dimension_numbers<[1], [0], [0], [1], [0, 0, 1, 1], [], []>} : vector<16x32xbf16>, vector<32x32xbf16>, vector<16x32xf32> -> vector<16x32xf32>
    %167 = vector.broadcast %136 : vector<1x32xf32> to vector<16x32xf32>
    %168 = arith.addf %166, %167 : vector<16x32xf32>
    %cst_162 = arith.constant dense<0.000000e+00> : vector<16x32xf32>
    %169 = tpu.matmul %165, %138, %cst_162 {dimension_numbers = #tpu.dot_dimension_numbers<[1], [0], [0], [1], [0, 0, 1, 1], [], []>} : vector<16x32xbf16>, vector<32x32xbf16>, vector<16x32xf32> -> vector<16x32xf32>
    %170 = vector.broadcast %140 : vector<1x32xf32> to vector<16x32xf32>
    %171 = arith.addf %169, %170 : vector<16x32xf32>
    %cst_163 = arith.constant dense<0.000000e+00> : vector<16x32xf32>
    %172 = tpu.matmul %165, %142, %cst_163 {dimension_numbers = #tpu.dot_dimension_numbers<[1], [0], [0], [1], [0, 0, 1, 1], [], []>} : vector<16x32xbf16>, vector<32x32xbf16>, vector<16x32xf32> -> vector<16x32xf32>
    %173 = vector.broadcast %144 : vector<1x32xf32> to vector<16x32xf32>
    %174 = arith.addf %172, %173 : vector<16x32xf32>
    %175 = vector.shape_cast %168 : vector<16x32xf32> to vector<2x8x32xf32>
    %176 = arith.truncf %175 : vector<2x8x32xf32> to vector<2x8x32xbf16>
    %177 = vector.shape_cast %171 : vector<16x32xf32> to vector<2x8x32xf32>
    %178 = arith.truncf %177 : vector<2x8x32xf32> to vector<2x8x32xbf16>
    %179 = vector.shape_cast %174 : vector<16x32xf32> to vector<2x8x32xf32>
    %180 = arith.truncf %179 : vector<2x8x32xf32> to vector<2x8x32xbf16>
    "tpu.trace_start"() <{level = 10 : i32, message = "bqh,bkh->bqk"}> : () -> ()
    %cst_164 = arith.constant dense<0.000000e+00> : vector<2x8x8xf32>
    %181 = tpu.matmul %176, %178, %cst_164 {dimension_numbers = #tpu.dot_dimension_numbers<[2], [2], [1], [1], [0, 0, 0, 1, 1, 1], [0], [0]>} : vector<2x8x32xbf16>, vector<2x8x32xbf16>, vector<2x8x8xf32> -> vector<2x8x8xf32>
    "tpu.trace_stop"() : () -> ()
    %182 = vector.broadcast %3 : vector<2x1x8xf32> to vector<2x8x8xf32>
    %183 = arith.addf %181, %182 : vector<2x8x8xf32>
    %cst_165 = arith.constant dense<0xFF800000> : vector<2x8xf32>
    %184 = vector.multi_reduction <maximumf>, %183, %cst_165 [2] : vector<2x8x8xf32> to vector<2x8xf32>
    %185 = vector.shape_cast %184 : vector<2x8xf32> to vector<2x8x1xf32>
    %186 = vector.broadcast %185 : vector<2x8x1xf32> to vector<2x8x8xf32>
    %187 = arith.subf %183, %186 : vector<2x8x8xf32>
    %188 = math.exp %187 : vector<2x8x8xf32>
    %cst_166 = arith.constant dense<0.000000e+00> : vector<2x8xf32>
    %189 = vector.multi_reduction <add>, %188, %cst_166 [2] : vector<2x8x8xf32> to vector<2x8xf32>
    %190 = vector.shape_cast %189 : vector<2x8xf32> to vector<2x8x1xf32>
    %191 = tpu.reciprocal %190 {approx = true} : vector<2x8x1xf32> -> vector<2x8x1xf32>
    %192 = vector.broadcast %191 : vector<2x8x1xf32> to vector<2x8x8xf32>
    %193 = arith.mulf %188, %192 : vector<2x8x8xf32>
    %194 = arith.truncf %193 : vector<2x8x8xf32> to vector<2x8x8xbf16>
    "tpu.trace_start"() <{level = 10 : i32, message = "bqk,bkh->bqh"}> : () -> ()
    %cst_167 = arith.constant dense<0.000000e+00> : vector<2x8x32xf32>
    %195 = tpu.matmul %194, %180, %cst_167 {dimension_numbers = #tpu.dot_dimension_numbers<[2], [1], [1], [2], [0, 0, 0, 1, 1, 2], [0], [0]>} : vector<2x8x8xbf16>, vector<2x8x32xbf16>, vector<2x8x32xf32> -> vector<2x8x32xf32>
    "tpu.trace_stop"() : () -> ()
    %196 = vector.shape_cast %195 : vector<2x8x32xf32> to vector<16x32xf32>
    %197 = arith.truncf %196 : vector<16x32xf32> to vector<16x32xbf16>
    %cst_168 = arith.constant dense<0.000000e+00> : vector<16x32xf32>
    %198 = tpu.matmul %197, %146, %cst_168 {dimension_numbers = #tpu.dot_dimension_numbers<[1], [0], [0], [1], [0, 0, 1, 1], [], []>} : vector<16x32xbf16>, vector<32x32xbf16>, vector<16x32xf32> -> vector<16x32xf32>
    %199 = vector.broadcast %148 : vector<1x32xf32> to vector<16x32xf32>
    %200 = arith.addf %198, %199 : vector<16x32xf32>
    %201 = arith.addf %132, %200 : vector<16x32xf32>
    %cst_169 = arith.constant dense<0.000000e+00> : vector<16xf32>
    %202 = vector.multi_reduction <add>, %201, %cst_169 [1] : vector<16x32xf32> to vector<16xf32>
    %203 = vector.shape_cast %202 : vector<16xf32> to vector<16x1xf32>
    %cst_170 = arith.constant 3.200000e+01 : f32
    %204 = vector.broadcast %cst_170 : f32 to vector<16x1xf32>
    %205 = arith.divf %203, %204 : vector<16x1xf32>
    %206 = vector.broadcast %205 : vector<16x1xf32> to vector<16x32xf32>
    %207 = arith.subf %201, %206 : vector<16x32xf32>
    %208 = arith.mulf %207, %207 : vector<16x32xf32>
    %cst_171 = arith.constant dense<0.000000e+00> : vector<16xf32>
    %209 = vector.multi_reduction <add>, %208, %cst_171 [1] : vector<16x32xf32> to vector<16xf32>
    %210 = vector.shape_cast %209 : vector<16xf32> to vector<16x1xf32>
    %cst_172 = arith.constant 3.200000e+01 : f32
    %211 = vector.broadcast %cst_172 : f32 to vector<16x1xf32>
    %212 = arith.divf %210, %211 : vector<16x1xf32>
    %cst_173 = arith.constant 9.99999974E-6 : f32
    %213 = vector.broadcast %cst_173 : f32 to vector<16x1xf32>
    %214 = arith.addf %212, %213 : vector<16x1xf32>
    %215 = math.rsqrt %214 : vector<16x1xf32>
    %216 = vector.broadcast %215 : vector<16x1xf32> to vector<16x32xf32>
    %217 = arith.mulf %207, %216 : vector<16x32xf32>
    %218 = vector.broadcast %150 : vector<1x32xf32> to vector<16x32xf32>
    %219 = arith.mulf %217, %218 : vector<16x32xf32>
    %220 = vector.broadcast %152 : vector<1x32xf32> to vector<16x32xf32>
    %221 = arith.addf %219, %220 : vector<16x32xf32>
    %222 = arith.truncf %221 : vector<16x32xf32> to vector<16x32xbf16>
    %cst_174 = arith.constant dense<0.000000e+00> : vector<16x64xf32>
    %223 = tpu.matmul %222, %154, %cst_174 {dimension_numbers = #tpu.dot_dimension_numbers<[1], [0], [0], [1], [0, 0, 1, 1], [], []>} : vector<16x32xbf16>, vector<32x64xbf16>, vector<16x64xf32> -> vector<16x64xf32>
    %224 = vector.broadcast %156 : vector<1x64xf32> to vector<16x64xf32>
    %225 = arith.addf %223, %224 : vector<16x64xf32>
    %cst_175 = arith.constant 0.000000e+00 : f32
    %226 = vector.broadcast %cst_175 : f32 to vector<16x64xf32>
    %227 = arith.maximumf %225, %226 : vector<16x64xf32>
    %228 = arith.truncf %227 : vector<16x64xf32> to vector<16x64xbf16>
    %cst_176 = arith.constant dense<0.000000e+00> : vector<16x32xf32>
    %229 = tpu.matmul %228, %158, %cst_176 {dimension_numbers = #tpu.dot_dimension_numbers<[1], [0], [0], [1], [0, 0, 1, 1], [], []>} : vector<16x64xbf16>, vector<64x32xbf16>, vector<16x32xf32> -> vector<16x32xf32>
    %230 = vector.broadcast %160 : vector<1x32xf32> to vector<16x32xf32>
    %231 = arith.addf %229, %230 : vector<16x32xf32>
    %232 = arith.addf %221, %231 : vector<16x32xf32>
    %cst_177 = arith.constant dense<0.000000e+00> : vector<16xf32>
    %233 = vector.multi_reduction <add>, %232, %cst_177 [1] : vector<16x32xf32> to vector<16xf32>
    %234 = vector.shape_cast %233 : vector<16xf32> to vector<16x1xf32>
    %cst_178 = arith.constant 3.200000e+01 : f32
    %235 = vector.broadcast %cst_178 : f32 to vector<16x1xf32>
    %236 = arith.divf %234, %235 : vector<16x1xf32>
    %237 = vector.broadcast %236 : vector<16x1xf32> to vector<16x32xf32>
    %238 = arith.subf %232, %237 : vector<16x32xf32>
    %239 = arith.mulf %238, %238 : vector<16x32xf32>
    %cst_179 = arith.constant dense<0.000000e+00> : vector<16xf32>
    %240 = vector.multi_reduction <add>, %239, %cst_179 [1] : vector<16x32xf32> to vector<16xf32>
    %241 = vector.shape_cast %240 : vector<16xf32> to vector<16x1xf32>
    %cst_180 = arith.constant 3.200000e+01 : f32
    %242 = vector.broadcast %cst_180 : f32 to vector<16x1xf32>
    %243 = arith.divf %241, %242 : vector<16x1xf32>
    %cst_181 = arith.constant 9.99999974E-6 : f32
    %244 = vector.broadcast %cst_181 : f32 to vector<16x1xf32>
    %245 = arith.addf %243, %244 : vector<16x1xf32>
    %246 = math.rsqrt %245 : vector<16x1xf32>
    %247 = vector.broadcast %246 : vector<16x1xf32> to vector<16x32xf32>
    %248 = arith.mulf %238, %247 : vector<16x32xf32>
    %249 = vector.broadcast %162 : vector<1x32xf32> to vector<16x32xf32>
    %250 = arith.mulf %248, %249 : vector<16x32xf32>
    %251 = vector.broadcast %164 : vector<1x32xf32> to vector<16x32xf32>
    %252 = arith.addf %250, %251 : vector<16x32xf32>
    %253 = vector.shape_cast %252 : vector<16x32xf32> to vector<2x8x32xf32>
    %cst_182 = arith.constant dense<0.000000e+00> : vector<2x32xf32>
    %254 = vector.multi_reduction <add>, %253, %cst_182 [1] : vector<2x8x32xf32> to vector<2x32xf32>
    %cst_183 = arith.constant 8.000000e+00 : f32
    %255 = vector.broadcast %cst_183 : f32 to vector<2x32xf32>
    %256 = arith.divf %254, %255 : vector<2x32xf32>
    %257 = arith.truncf %256 : vector<2x32xf32> to vector<2x32xbf16>
    %c0_184 = arith.constant 0 : index
    %c0_185 = arith.constant 0 : index
    %c0_186 = arith.constant 0 : index
    %258 = vector.load %arg21[%c0_184, %c0_185, %c0_186] : memref<1x32x4xbf16, #tpu.memory_space<vmem>>, vector<1x32x4xbf16>
    %259 = vector.shape_cast %258 : vector<1x32x4xbf16> to vector<32x4xbf16>
    %cst_187 = arith.constant dense<0.000000e+00> : vector<2x4xf32>
    %260 = tpu.matmul %257, %259, %cst_187 {dimension_numbers = #tpu.dot_dimension_numbers<[1], [0], [0], [1], [0, 0, 1, 1], [], []>} : vector<2x32xbf16>, vector<32x4xbf16>, vector<2x4xf32> -> vector<2x4xf32>
    %c0_188 = arith.constant 0 : index
    %c0_189 = arith.constant 0 : index
    %c0_190 = arith.constant 0 : index
    %261 = vector.load %arg22[%c0_188, %c0_189, %c0_190] : memref<1x1x4xf32, #tpu.memory_space<vmem>>, vector<1x1x4xf32>
    %262 = vector.shape_cast %261 : vector<1x1x4xf32> to vector<1x4xf32>
    %263 = vector.broadcast %262 : vector<1x4xf32> to vector<2x4xf32>
    %264 = arith.addf %260, %263 : vector<2x4xf32>
    %c0_191 = arith.constant 0 : index
    %c0_192 = arith.constant 0 : index
    %c0_193 = arith.constant 0 : index
    %265 = vector.load %arg23[%c0_191, %c0_192, %c0_193] : memref<1x2x4xf32, #tpu.memory_space<vmem>>, vector<1x2x4xf32>
    %266 = vector.shape_cast %265 : vector<1x2x4xf32> to vector<2x4xf32>
    %267 = vector.shape_cast %264 : vector<2x4xf32> to vector<1x2x4xf32>
    tpu.vector_store %arg23[%c0_191, %c0_192, %c0_193], %267 {strides = array<i32>} : memref<1x2x4xf32, #tpu.memory_space<vmem>>, vector<1x2x4xf32>,
    return
  }
  func.func @transform_0(%arg0: i32) -> (i32, i32, i32, i32) {
    %c0_i32 = arith.constant 0 : i32
    %c0_i32_0 = arith.constant 0 : i32
    %c0_i32_1 = arith.constant 0 : i32
    %c0_i32_2 = arith.constant 0 : i32
    return %arg0, %c0_i32, %c0_i32_0, %c0_i32_1 : i32, i32, i32, i32
  }
  func.func @transform_1(%arg0: i32) -> (i32, i32, i32, i32) {
    %c0_i32 = arith.constant 0 : i32
    %c0_i32_0 = arith.constant 0 : i32
    %c0_i32_1 = arith.constant 0 : i32
    %c0_i32_2 = arith.constant 0 : i32
    return %arg0, %c0_i32, %c0_i32_0, %c0_i32_1 : i32, i32, i32, i32
  }
  func.func @transform_2(%arg0: i32) -> (i32, i32, i32) {
    %c0_i32 = arith.constant 0 : i32
    %c0_i32_0 = arith.constant 0 : i32
    %c0_i32_1 = arith.constant 0 : i32
    return %arg0, %c0_i32, %c0_i32_0 : i32, i32, i32
  }
  func.func @transform_3(%arg0: i32) -> (i32, i32, i32) {
    %c0_i32 = arith.constant 0 : i32
    %c0_i32_0 = arith.constant 0 : i32
    %c0_i32_1 = arith.constant 0 : i32
    return %arg0, %c0_i32, %c0_i32_0 : i32, i32, i32
  }
  func.func @transform_4(%arg0: i32) -> (i32, i32, i32, i32) {
    %c0_i32 = arith.constant 0 : i32
    %c0_i32_0 = arith.constant 0 : i32
    %c0_i32_1 = arith.constant 0 : i32
    %c0_i32_2 = arith.constant 0 : i32
    return %arg0, %c0_i32, %c0_i32_0, %c0_i32_1 : i32, i32, i32, i32
  }
  func.func @transform_5(%arg0: i32) -> (i32, i32, i32, i32) {
    %c0_i32 = arith.constant 0 : i32
    %c0_i32_0 = arith.constant 0 : i32
    %c0_i32_1 = arith.constant 0 : i32
    %c0_i32_2 = arith.constant 0 : i32
    return %arg0, %c0_i32, %c0_i32_0, %c0_i32_1 : i32, i32, i32, i32
  }
  func.func @transform_6(%arg0: i32) -> (i32, i32, i32, i32) {
    %c0_i32 = arith.constant 0 : i32
    %c0_i32_0 = arith.constant 0 : i32
    %c0_i32_1 = arith.constant 0 : i32
    %c0_i32_2 = arith.constant 0 : i32
    return %arg0, %c0_i32, %c0_i32_0, %c0_i32_1 : i32, i32, i32, i32
  }
  func.func @transform_7(%arg0: i32) -> (i32, i32, i32, i32) {
    %c0_i32 = arith.constant 0 : i32
    %c0_i32_0 = arith.constant 0 : i32
    %c0_i32_1 = arith.constant 0 : i32
    %c0_i32_2 = arith.constant 0 : i32
    return %arg0, %c0_i32, %c0_i32_0, %c0_i32_1 : i32, i32, i32, i32
  }
  func.func @transform_8(%arg0: i32) -> (i32, i32, i32, i32) {
    %c0_i32 = arith.constant 0 : i32
    %c0_i32_0 = arith.constant 0 : i32
    %c0_i32_1 = arith.constant 0 : i32
    %c0_i32_2 = arith.constant 0 : i32
    return %arg0, %c0_i32, %c0_i32_0, %c0_i32_1 : i32, i32, i32, i32
  }
  func.func @transform_9(%arg0: i32) -> (i32, i32, i32, i32) {
    %c0_i32 = arith.constant 0 : i32
    %c0_i32_0 = arith.constant 0 : i32
    %c0_i32_1 = arith.constant 0 : i32
    %c0_i32_2 = arith.constant 0 : i32
    return %arg0, %c0_i32, %c0_i32_0, %c0_i32_1 : i32, i32, i32, i32
  }
  func.func @transform_10(%arg0: i32) -> (i32, i32, i32, i32) {
    %c0_i32 = arith.constant 0 : i32
    %c0_i32_0 = arith.constant 0 : i32
    %c0_i32_1 = arith.constant 0 : i32
    %c0_i32_2 = arith.constant 0 : i32
    return %arg0, %c0_i32, %c0_i32_0, %c0_i32_1 : i32, i32, i32, i32
  }
  func.func @transform_11(%arg0: i32) -> (i32, i32, i32, i32) {
    %c0_i32 = arith.constant 0 : i32
    %c0_i32_0 = arith.constant 0 : i32
    %c0_i32_1 = arith.constant 0 : i32
    %c0_i32_2 = arith.constant 0 : i32
    return %arg0, %c0_i32, %c0_i32_0, %c0_i32_1 : i32, i32, i32, i32
  }
  func.func @transform_12(%arg0: i32) -> (i32, i32, i32, i32) {
    %c0_i32 = arith.constant 0 : i32
    %c0_i32_0 = arith.constant 0 : i32
    %c0_i32_1 = arith.constant 0 : i32
    %c0_i32_2 = arith.constant 0 : i32
    return %arg0, %c0_i32, %c0_i32_0, %c0_i32_1 : i32, i32, i32, i32
  }
  func.func @transform_13(%arg0: i32) -> (i32, i32, i32, i32) {
    %c0_i32 = arith.constant 0 : i32
    %c0_i32_0 = arith.constant 0 : i32
    %c0_i32_1 = arith.constant 0 : i32
    %c0_i32_2 = arith.constant 0 : i32
    return %arg0, %c0_i32, %c0_i32_0, %c0_i32_1 : i32, i32, i32, i32
  }
  func.func @transform_14(%arg0: i32) -> (i32, i32, i32, i32) {
    %c0_i32 = arith.constant 0 : i32
    %c0_i32_0 = arith.constant 0 : i32
    %c0_i32_1 = arith.constant 0 : i32
    %c0_i32_2 = arith.constant 0 : i32
    return %arg0, %c0_i32, %c0_i32_0, %c0_i32_1 : i32, i32, i32, i32
  }
  func.func @transform_15(%arg0: i32) -> (i32, i32, i32, i32) {
    %c0_i32 = arith.constant 0 : i32
    %c0_i32_0 = arith.constant 0 : i32
    %c0_i32_1 = arith.constant 0 : i32
    %c0_i32_2 = arith.constant 0 : i32
    return %arg0, %c0_i32, %c0_i32_0, %c0_i32_1 : i32, i32, i32, i32
  }
  func.func @transform_16(%arg0: i32) -> (i32, i32, i32, i32) {
    %c0_i32 = arith.constant 0 : i32
    %c0_i32_0 = arith.constant 0 : i32
    %c0_i32_1 = arith.constant 0 : i32
    %c0_i32_2 = arith.constant 0 : i32
    return %arg0, %c0_i32, %c0_i32_0, %c0_i32_1 : i32, i32, i32, i32
  }
  func.func @transform_17(%arg0: i32) -> (i32, i32, i32, i32) {
    %c0_i32 = arith.constant 0 : i32
    %c0_i32_0 = arith.constant 0 : i32
    %c0_i32_1 = arith.constant 0 : i32
    %c0_i32_2 = arith.constant 0 : i32
    return %arg0, %c0_i32, %c0_i32_0, %c0_i32_1 : i32, i32, i32, i32
  }
  func.func @transform_18(%arg0: i32) -> (i32, i32, i32, i32) {
    %c0_i32 = arith.constant 0 : i32
    %c0_i32_0 = arith.constant 0 : i32
    %c0_i32_1 = arith.constant 0 : i32
    %c0_i32_2 = arith.constant 0 : i32
    return %arg0, %c0_i32, %c0_i32_0, %c0_i32_1 : i32, i32, i32, i32
  }
  func.func @transform_19(%arg0: i32) -> (i32, i32, i32, i32) {
    %c0_i32 = arith.constant 0 : i32
    %c0_i32_0 = arith.constant 0 : i32
    %c0_i32_1 = arith.constant 0 : i32
    %c0_i32_2 = arith.constant 0 : i32
    return %arg0, %c0_i32, %c0_i32_0, %c0_i32_1 : i32, i32, i32, i32
  }
  func.func @transform_20(%arg0: i32) -> (i32, i32, i32) {
    %c0_i32 = arith.constant 0 : i32
    %c0_i32_0 = arith.constant 0 : i32
    %c0_i32_1 = arith.constant 0 : i32
    return %arg0, %c0_i32, %c0_i32_0 : i32, i32, i32
  }
  func.func @transform_21(%arg0: i32) -> (i32, i32, i32) {
    %c0_i32 = arith.constant 0 : i32
    %c0_i32_0 = arith.constant 0 : i32
    %c0_i32_1 = arith.constant 0 : i32
    return %arg0, %c0_i32, %c0_i32_0 : i32, i32, i32
  }
  func.func @transform_22(%arg0: i32) -> (i32, i32, i32) {
    %c0_i32 = arith.constant 0 : i32
    %c0_i32_0 = arith.constant 0 : i32
    %c0_i32_1 = arith.constant 0 : i32
    return %arg0, %c0_i32, %c0_i32_0 : i32, i32, i32
  }
}

</mosaic_0001>

<bundles_post_ra>
// kernel: two_head_forward.1
= control target key start
LH: loop header
LB: loop body
LE: loop exit
PB: predicated region body
PF: predicated region fallthrough
CT: control target
= control target key end

     0   :  { %s5391_s0 = inlined_call_operand.vmem [shape: f32[2,2,8,32], index: 0, kind: input, shape index: {}]   ;;  %s5392_s1 = inlined_call_operand.vmem [shape: f32[2,2,1,8], index: 1, kind: input, shape index: {}]   ;;  %s5393_s2 = inlined_call_operand.hbm [shape: bf16[2,32,32], index: 2, kind: input, shape index: {}]   ;;  %s5394_s3 = inlined_call_operand.hbm [shape: f32[2,1,32], index: 3, kind: input, shape index: {}]   ;;  %s5395_s4 = inlined_call_operand.vmem [shape: bf16[2,2,32,32], index: 4, kind: input, shape index: {}]   ;;  %s5396_s5 = inlined_call_operand.hbm [shape: f32[2,2,1,32], index: 5, kind: input, shape index: {}]   ;;  %s5397_s6 = inlined_call_operand.vmem [shape: bf16[2,2,32,32], index: 6, kind: input, shape index: {}]   ;;  %s5398_s7 = inlined_call_operand.hbm [shape: f32[2,2,1,32], index: 7, kind: input, shape index: {}]   ;;  %s5399_s8 = inlined_call_operand.hbm [shape: bf16[2,2,32,32], index: 8, kind: input, shape index: {}]   ;;  %s5400_s9 = inlined_call_operand.hbm [shape: f32[2,2,1,32], index: 9, kind: input, shape index: {}]   ;;  %s5401_s10 = inlined_call_operand.hbm [shape: bf16[2,2,32,32], index: 10, kind: input, shape index: {}]   ;;  %s5402_s11 = inlined_call_operand.hbm [shape: f32[2,2,1,32], index: 11, kind: input, shape index: {}]   ;;  %s5403_s12 = inlined_call_operand.vmem [shape: f32[2,2,1,32], index: 12, kind: input, shape index: {}, may-alias: {12,18}]   ;;  %s5404_s13 = inlined_call_operand.vmem [shape: f32[2,2,1,32], index: 13, kind: input, shape index: {}, may-alias: {13,19}]   ;;  %s5405_s14 = inlined_call_operand.hbm [shape: bf16[2,2,32,64], index: 14, kind: input, shape index: {}]   ;;  %s5406_s15 = inlined_call_operand.hbm [shape: f32[2,2,1,64], index: 15, kind: input, shape index: {}]   ;;  %s5407_s16 = inlined_call_operand.vmem [shape: bf16[2,2,64,32], index: 16, kind: input, shape index: {}]   ;;  %s5408_s17 = inlined_call_operand.hbm [shape: f32[2,2,1,32], index: 17, kind: input, shape index: {}]   ;;  %s5409_s18 = inlined_call_operand.vmem [shape: f32[2,2,1,32], index: 18, kind: input, shape index: {}, may-alias: {12,18}]   ;;  %s5410_s19 = inlined_call_operand.vmem [shape: f32[2,2,1,32], index: 19, kind: input, shape index: {}, may-alias: {13,19}]   ;;  %s5411_s20 = inlined_call_operand.hbm [shape: bf16[2,32,4], index: 20, kind: input, shape index: {}]   ;;  %s5412_s21 = inlined_call_operand.hbm [shape: f32[2,1,4], index: 21, kind: input, shape index: {}]   ;;  %s5413_s22 = inlined_call_operand.vmem [shape: f32[2,2,4], index: 22, kind: output, shape index: {}]  }
   0x1   :  { %5437 = sst [smem:[#allocation32_spill]] %s5391_s0 }
   0x2   :  { %5438 = sst [smem:[#allocation33_spill]] %s5392_s1 }
   0x3   :  { %5439 = sst [smem:[#allocation34_spill]] %s5393_s2 }
   0x4   :  { %5440 = sst [smem:[#allocation35_spill]] %s5394_s3 }
   0x5   :  { %5441 = sst [smem:[#allocation36_spill]] %s5395_s4 }
   0x6   :  { %5442 = sst [smem:[#allocation37_spill]] %s5396_s5 }
   0x7   :  { %5443 = sst [smem:[#allocation38_spill]] %s5397_s6 }
   0x8   :  { %5444 = sst [smem:[#allocation39_spill]] %s5398_s7 }
   0x9   :  { %5445 = sst [smem:[#allocation40_spill]] %s5399_s8 }
   0xa   :  { %5446 = sst [smem:[#allocation41_spill]] %s5400_s9 }
   0xb   :  { %5447 = sst [smem:[#allocation42_spill]] %s5401_s10 }
   0xc   :  { %5448 = sst [smem:[#allocation43_spill]] %s5402_s11 }
   0xd   :  { %5449 = sst [smem:[#allocation44_spill]] %s5403_s12 }
   0xe   :  { %5450 = sst [smem:[#allocation45_spill]] %s5404_s13 }
   0xf   :  { %5451 = sst [smem:[#allocation46_spill]] %s5406_s15 }
  0x10   :  { %5452 = sst [smem:[#allocation47_spill]] %s5407_s16 }
  0x11   :  { %5453 = sst [smem:[#allocation48_spill]] %s5409_s18 }
  0x12   :  { %5454 = sst [smem:[#allocation49_spill]] %s5410_s19 }
  0x13   :  { %5455 = sst [smem:[#allocation50_spill]] %s5411_s20 }
  0x14   :  { %5456 = sst [smem:[#allocation51_spill]] %s5413_s22 }
  0x15   :  { %27 = vsyncpa [#allocation3], 0 }
  0x16   :  { %29 = vsyncpa [#allocation3 + $0x1], 0 }
  0x17   :  { %30 = vsyncpa [#allocation5], 0 }
  0x18   :  { %32 = vsyncpa [#allocation5 + $0x1], 0 }
  0x19   :  { %33 = vsyncpa [#allocation8], 0 }
  0x1a   :  { %35 = vsyncpa [#allocation8 + $0x1], 0 }
  0x1b   :  { %36 = vsyncpa [#allocation11], 0 }
  0x1c   :  { %38 = vsyncpa [#allocation11 + $0x1], 0 }
  0x1d   :  { %39 = vsyncpa [#allocation14], 0 }
  0x1e   :  { %41 = vsyncpa [#allocation14 + $0x1], 0 }
  0x1f   :  { %42 = vsyncpa [#allocation17], 0 }
  0x20   :  { %44 = vsyncpa [#allocation17 + $0x1], 0 }
  0x21   :  { %45 = vsyncpa [#allocation20], 0 }
  0x22   :  { %47 = vsyncpa [#allocation20 + $0x1], 0  ;;  %s4503_s3 = smov 0   ;;  %s4505_s28 = smov 0  }
  0x23   :  { %s4507_s29 = smov 0   ;;  %s4509_s30 = smov 0  }
  0x24 LB: > { %5457 = sst [smem:[#allocation29_spill]] %s4363_s29  ;;  %s4522_s4 = sadd.s32 4294967295, %s4367_s30   ;;  %s4367_s30 = sphi %s4509_s30, %s5493_s30   ;;  %s4363_s29 = sphi %s4507_s29, %s5495_s29   ;;  %s4359_s28 = sphi %s4505_s28, %s5497_s28   ;;  %s4355_s3 = sphi %s4503_s3, %s5496_s3  }
  0x25   : > { %s4525_s0 = sadd.s32 1, %s4367_s30   ;;  %s112_s1 = sadd.s32 1, %s4363_s29 }
  0x26   : > { %5458 = sst [smem:[#allocation30_spill]] %s4525_s0  ;;  %s109_s23 = ssub.s32 %s4367_s30, %s4525_s0 }
  0x27   : > { %p110_p0 = scmp.eq.s32.totalorder %s109_s23, 0  ;;  %p119_p1 = scmp.ne.s32.totalorder %s4363_s29, %s4359_s28 }
  0x28   : > { %p120_p2 = scmp.eq.s32.totalorder %s4367_s30, 0  ;;  %p125_p3 = scmp.ne.s32.totalorder %s4359_s28, %s4355_s3 }
  0x29   : > { %s4535_s5 = scalar_select %p110_p0, %s4363_s29, %s112_s1  }
  0x2a   : > { %p4537_p4 = por %p120_p2, %p119_p1  ;;  %p126_p5 = scmp.eq.s32.totalorder %s4522_s4, 0 }
  0x2b   : > { %5459 = sst [smem:[#allocation31_spill]] %s4535_s5  ;;  %p3392_p7 = scmp.ge.s32.totalorder %s4367_s30, 2 }
  0x2c   : > { %p4542_p6 = por %p126_p5, %p125_p3  ;;  %s4548_s25 = sand.u32 (!%p3392_p7), 1, %s4363_s29  }
  0x2d   : > { %665 = sbr.rel (%p3392_p7) target bundleno = 402 (0x192), region = 16  ;;  %s4551_s26 = sand.u32 (!%p3392_p7), 1, %s4367_s30  }
  0x2e   : > { %s5461_s6 = scalar_select %p4542_p6, 1, 0 }
  0x2f   : > { %s5420_s2 = sshll.u32 (!%p3392_p7), %s4367_s30, 4  ;;  %s708_s27 = scalar_lea.vmem (!%p3392_p7), [#allocation4], %s4548_s25 }
  0x30   : > { %s715_s3 = sshll.u32 (!%p3392_p7), %s708_s27, 4  ;;  %s5462_s5 = sld [smem:[#allocation35_spill]] (!%p3392_p7)  ;;  %s716_s3 = int_to_ptr.vmem [resolvable:$true] %s715_s3 }
  0x31   : > { %s5422_s29 = scalar_lea.sflag (!%p3392_p7), [#allocation5], %s4551_s26 }
  0x36   : > { %s4560_s0 = scalar_lea.hbm %s5462_s5, %s5420_s2  ;;  %s3949_s27 = scalar_lea.hbm %s5462_s5, 32 }
  0x37   : > { %s3945_s22 = scalar_lea.hbm %s4560_s0, 16  ;;  %p3950_p11 = scmp.lt.u32.totalorder %s4560_s0, %s5462_s5 }
  0x38   : > { %p3946_p8 = scmp.ne.s32.totalorder %s4560_s0, %s3945_s22  ;;  %p3951_p12 = scmp.lt.u32.totalorder %s3949_s27, %s3945_s22 }
  0x39   : > { %p3953_p0 = scmp.lt.u32.totalorder %s3945_s22, %s4560_s0 }
  0x3a   : > { %p3947_p9 = pnand %p3946_p8, %p4537_p4  ;;  %p3952_p13 = por %p3951_p12, %p3950_p11 }
  0x3c   : > { %p3948_p10 = pneg %p3947_p9  ;;  %p3954_p1 = por %p3953_p0, %p3952_p13 }
  0x3e   : > { %p3955_p2 = pnand %p3954_p1, %p3948_p10 }
  0x40   : > { %3958 = shalt.err (!%p3955_p2)
}
  0x41   : > { %s3959_s23 = scalar_lea.vmem %s716_s3, 16  ;;  %s4369_s1 = smov [#allocation4]  }
  0x42   : > { %p3960_p3 = scmp.ne.s32.totalorder %s716_s3, %s3959_s23  ;;  %s3963_s2 = sshll.u32 %s4369_s1, 4  ;;  %s3964_s2 = int_to_ptr.vmem [resolvable:$false] %s3963_s2 }
  0x43   : > { %s3965_s18 = scalar_lea.vmem %s3964_s2, 32  ;;  %p3966_p8 = scmp.lt.s32.totalorder %s716_s3, %s3964_s2 }
  0x44   : > { %p3961_p5 = pnand %p3960_p3, %p4537_p4  ;;  %p3967_p9 = scmp.lt.s32.totalorder %s3965_s18, %s3959_s23 }
  0x46   : > { %p3962_p7 = pneg %p3961_p5  ;;  %p3968_p6 = por %p3967_p9, %p3966_p8 }
  0x48   : > { %p3969_p11 = pnand %p3968_p6, %p3962_p7 }
  0x4a   : > { %3972 = shalt.err (!%p3969_p11)
}
  0x4b   : > { %3818 = dma.hbm_to_vmem [thread:$0]  (%p4537_p4), %s4560_s0, 16, %s716_s3, %s5422_s29  }
  0x4c   : > { %s4583_s12 = sshll.u32 %s4548_s25, 1  ;;  %s4586_s13 = sshll.u32 %s4367_s30, 5 }
  0x4d   : > { %s5463_s7 = sld [smem:[#allocation39_spill]]  ;;  %s763_s27 = scalar_lea.vmem [#allocation7], %s4583_s12 }
  0x4e   : > { %s770_s23 = sshll.u32 %s763_s27, 4  ;;  %s5424_s0 = scalar_lea.sflag [#allocation8], %s4551_s26  ;;  %s4595_s23 = int_to_ptr.vmem [resolvable:$true] %s770_s23 }
  0x53   : > { %s4592_s2 = scalar_lea.hbm %s5463_s7, %s4586_s13  ;;  %s3977_s19 = scalar_lea.hbm %s5463_s7, 64 }
  0x54   : > { %s3973_s3 = scalar_lea.hbm %s4592_s2, 32  ;;  %p3978_p13 = scmp.lt.u32.totalorder %s4592_s2, %s5463_s7 }
  0x55   : > { %p3974_p6 = scmp.ne.s32.totalorder %s4592_s2, %s3973_s3  ;;  %p3979_p0 = scmp.lt.u32.totalorder %s3977_s19, %s3973_s3 }
  0x56   : > { %p3981_p2 = scmp.lt.u32.totalorder %s3973_s3, %s4592_s2 }
  0x57   : > { %p3975_p10 = pnand %p3974_p6, %p4537_p4  ;;  %p3980_p1 = por %p3979_p0, %p3978_p13 }
  0x59   : > { %p3976_p12 = pneg %p3975_p10  ;;  %p3982_p3 = por %p3981_p2, %p3980_p1 }
  0x5b   : > { %p3983_p5 = pnand %p3982_p3, %p3976_p12 }
  0x5d   : > { %3986 = shalt.err (!%p3983_p5)
}
  0x5e   : > { %s3987_s27 = scalar_lea.vmem %s4595_s23, 32  ;;  %s4370_s1 = smov [#allocation7]  }
  0x5f   : > { %p3988_p7 = scmp.ne.s32.totalorder %s4595_s23, %s3987_s27  ;;  %s3991_s18 = sshll.u32 %s4370_s1, 4  ;;  %s3992_s18 = int_to_ptr.vmem [resolvable:$false] %s3991_s18 }
  0x60   : > { %s3993_s29 = scalar_lea.vmem %s3992_s18, 64  ;;  %p3994_p11 = scmp.lt.s32.totalorder %s4595_s23, %s3992_s18 }
  0x61   : > { %p3989_p8 = pnand %p3988_p7, %p4537_p4  ;;  %p3995_p6 = scmp.lt.s32.totalorder %s3993_s29, %s3987_s27 }
  0x63   : > { %p3990_p9 = pneg %p3989_p8  ;;  %p3996_p10 = por %p3995_p6, %p3994_p11 }
  0x65   : > { %p3997_p13 = pnand %p3996_p10, %p3990_p9 }
  0x67   : > { %4000 = shalt.err (!%p3997_p13)
}
  0x68   : > { %s5428_s3 = smov 16   ;;  %s5430_s19 = smov 1  }
  0x69   : > { %3820 = dma.hbm_to_vmem [thread:$0]  (%p4537_p4), %s4592_s2, 32, %s4595_s23, %s5424_s0, %s5428_s3, %s5428_s3, %s5430_s19  }
  0x6a   : > { %s5464_s9 = sld [smem:[#allocation41_spill]]  ;;  %s805_s18 = scalar_lea.vmem [#allocation10], %s4583_s12 }
  0x6b   : > { %s812_s29 = sshll.u32 %s805_s18, 4  ;;  %s5425_s5 = scalar_lea.sflag [#allocation11], %s4551_s26  ;;  %s4631_s29 = int_to_ptr.vmem [resolvable:$true] %s812_s29 }
  0x70   : > { %s4628_s1 = scalar_lea.hbm %s5464_s9, %s4586_s13  ;;  %s4005_s22 = scalar_lea.hbm %s5464_s9, 64 }
  0x71   : > { %s4001_s7 = scalar_lea.hbm %s4628_s1, 32  ;;  %p4006_p2 = scmp.lt.u32.totalorder %s4628_s1, %s5464_s9 }
  0x72   : > { %p4002_p12 = scmp.ne.s32.totalorder %s4628_s1, %s4001_s7  ;;  %p4007_p3 = scmp.lt.u32.totalorder %s4005_s22, %s4001_s7 }
  0x73   : > { %p4009_p7 = scmp.lt.u32.totalorder %s4001_s7, %s4628_s1 }
  0x74   : > { %p4003_p0 = pnand %p4002_p12, %p4537_p4  ;;  %p4008_p5 = por %p4007_p3, %p4006_p2 }
  0x76   : > { %p4004_p1 = pneg %p4003_p0  ;;  %p4010_p8 = por %p4009_p7, %p4008_p5 }
  0x78   : > { %p4011_p9 = pnand %p4010_p8, %p4004_p1 }
  0x7a   : > { %4014 = shalt.err (!%p4011_p9)
}
  0x7b   : > { %s4015_s18 = scalar_lea.vmem %s4631_s29, 32  ;;  %s4373_s2 = smov [#allocation10]  }
  0x7c   : > { %p4016_p11 = scmp.ne.s32.totalorder %s4631_s29, %s4015_s18  ;;  %s4019_s23 = sshll.u32 %s4373_s2, 4  ;;  %s4020_s23 = int_to_ptr.vmem [resolvable:$false] %s4019_s23 }
  0x7d   : > { %s4021_s0 = scalar_lea.vmem %s4020_s23, 64  ;;  %p4022_p13 = scmp.lt.s32.totalorder %s4631_s29, %s4020_s23 }
  0x7e   : > { %p4017_p6 = pnand %p4016_p11, %p4537_p4  ;;  %p4023_p12 = scmp.lt.s32.totalorder %s4021_s0, %s4015_s18 }
  0x80   : > { %p4018_p10 = pneg %p4017_p6  ;;  %p4024_p0 = por %p4023_p12, %p4022_p13 }
  0x82   : > { %p4025_p2 = pnand %p4024_p0, %p4018_p10 }
  0x84   : > { %4028 = shalt.err (!%p4025_p2)
}
  0x85   : > { %3822 = dma.hbm_to_vmem [thread:$0]  (%p4537_p4), %s4628_s1, 32, %s4631_s29, %s5425_s5, %s5428_s3, %s5428_s3, %s5430_s19  }
  0x86   : > { %s5465_s11 = sld [smem:[#allocation43_spill]]  ;;  %s847_s18 = scalar_lea.vmem [#allocation13], %s4583_s12 }
  0x87   : > { %s854_s2 = sshll.u32 %s847_s18, 4  ;;  %s5426_s23 = scalar_lea.sflag [#allocation14], %s4551_s26  ;;  %s4667_s2 = int_to_ptr.vmem [resolvable:$true] %s854_s2 }
  0x8c   : > { %s4664_s27 = scalar_lea.hbm %s5465_s11, %s4586_s13  ;;  %s4033_s7 = scalar_lea.hbm %s5465_s11, 64 }
  0x8d   : > { %s4029_s0 = scalar_lea.hbm %s4664_s27, 32  ;;  %p4034_p7 = scmp.lt.u32.totalorder %s4664_s27, %s5465_s11 }
  0x8e   : > { %p4030_p1 = scmp.ne.s32.totalorder %s4664_s27, %s4029_s0  ;;  %p4035_p8 = scmp.lt.u32.totalorder %s4033_s7, %s4029_s0 }
  0x8f   : > { %p4037_p11 = scmp.lt.u32.totalorder %s4029_s0, %s4664_s27 }
  0x90   : > { %p4031_p3 = pnand %p4030_p1, %p4537_p4  ;;  %p4036_p9 = por %p4035_p8, %p4034_p7 }
  0x92   : > { %p4032_p5 = pneg %p4031_p3  ;;  %p4038_p6 = por %p4037_p11, %p4036_p9 }
  0x94   : > { %p4039_p10 = pnand %p4038_p6, %p4032_p5 }
  0x96   : > { %4042 = shalt.err (!%p4039_p10)
}
  0x97   : > { %s4043_s18 = scalar_lea.vmem %s4667_s2, 32  ;;  %s4374_s1 = smov [#allocation13]  }
  0x98   : > { %p4044_p13 = scmp.ne.s32.totalorder %s4667_s2, %s4043_s18  ;;  %s4047_s29 = sshll.u32 %s4374_s1, 4  ;;  %s4048_s29 = int_to_ptr.vmem [resolvable:$false] %s4047_s29 }
  0x99   : > { %s4049_s5 = scalar_lea.vmem %s4048_s29, 64  ;;  %p4050_p2 = scmp.lt.s32.totalorder %s4667_s2, %s4048_s29 }
  0x9a   : > { %p4045_p12 = pnand %p4044_p13, %p4537_p4  ;;  %p4051_p1 = scmp.lt.s32.totalorder %s4049_s5, %s4043_s18 }
  0x9c   : > { %p4046_p0 = pneg %p4045_p12  ;;  %p4052_p3 = por %p4051_p1, %p4050_p2 }
  0x9e   : > { %p4053_p7 = pnand %p4052_p3, %p4046_p0 }
  0xa0   : > { %4056 = shalt.err (!%p4053_p7)
}
  0xa1   : > { %3824 = dma.hbm_to_vmem [thread:$0]  (%p4537_p4), %s4664_s27, 32, %s4667_s2, %s5426_s23, %s5428_s3, %s5428_s3, %s5430_s19  }
  0xa2   : > { %s5466_s15 = sld [smem:[#allocation46_spill]]  ;;  %s903_s18 = scalar_lea.vmem [#allocation16], %s4583_s12 }
  0xa3   : > { %s910_s1 = sshll.u32 %s903_s18, 4  ;;  %s3393_s29 = sshll.u32 %s4548_s25, 4  ;;  %s4704_s1 = int_to_ptr.vmem [resolvable:$true] %s910_s1 }
  0xa4   : > { %s3572_s5 = sshll.u32 %s4367_s30, 8  ;;  %s5427_s9 = scalar_lea.sflag [#allocation17], %s4551_s26 }
  0xa8   : > { %s4700_s22 = scalar_lea.hbm %s5466_s15, %s4586_s13  ;;  %s4061_s0 = scalar_lea.hbm %s5466_s15, 64 }
  0xa9   : > { %s4057_s11 = scalar_lea.hbm %s4700_s22, 32  ;;  %p4062_p11 = scmp.lt.u32.totalorder %s4700_s22, %s5466_s15 }
  0xaa   : > { %p4058_p5 = scmp.ne.s32.totalorder %s4700_s22, %s4057_s11  ;;  %p4063_p6 = scmp.lt.u32.totalorder %s4061_s0, %s4057_s11 }
  0xab   : > { %p4065_p13 = scmp.lt.u32.totalorder %s4057_s11, %s4700_s22 }
  0xac   : > { %p4059_p8 = pnand %p4058_p5, %p4537_p4  ;;  %p4064_p10 = por %p4063_p6, %p4062_p11 }
  0xae   : > { %p4060_p9 = pneg %p4059_p8  ;;  %p4066_p12 = por %p4065_p13, %p4064_p10 }
  0xb0   : > { %p4067_p0 = pnand %p4066_p12, %p4060_p9 }
  0xb2   : > { %4070 = shalt.err (!%p4067_p0)
}
  0xb3   : > { %s4071_s18 = scalar_lea.vmem %s4704_s1, 32  ;;  %s4375_s27 = smov [#allocation16]  }
  0xb4   : > { %p4072_p2 = scmp.ne.s32.totalorder %s4704_s1, %s4071_s18  ;;  %s4075_s2 = sshll.u32 %s4375_s27, 4  ;;  %s4076_s2 = int_to_ptr.vmem [resolvable:$false] %s4075_s2 }
  0xb5   : > { %s4077_s23 = scalar_lea.vmem %s4076_s2, 64  ;;  %p4078_p7 = scmp.lt.s32.totalorder %s4704_s1, %s4076_s2 }
  0xb6   : > { %p4073_p1 = pnand %p4072_p2, %p4537_p4  ;;  %p4079_p5 = scmp.lt.s32.totalorder %s4077_s23, %s4071_s18 }
  0xb8   : > { %p4074_p3 = pneg %p4073_p1  ;;  %p4080_p8 = por %p4079_p5, %p4078_p7 }
  0xba   : > { %p4081_p11 = pnand %p4080_p8, %p4074_p3 }
  0xbc   : > { %4084 = shalt.err (!%p4081_p11)
}
  0xbd   : > { %3826 = dma.hbm_to_vmem [thread:$0]  (%p4537_p4), %s4700_s22, 32, %s4704_s1, %s5427_s9, %s5428_s3, %s5428_s3, %s5430_s19  }
  0xbe   : > { %s5467_s20 = sld [smem:[#allocation50_spill]]  ;;  %s967_s18 = scalar_lea.vmem [#allocation19], %s3393_s29 }
  0xbf   : > { %s974_s27 = sshll.u32 %s967_s18, 4  ;;  %s5432_s2 = scalar_lea.sflag [#allocation20], %s4551_s26  ;;  %s4743_s27 = int_to_ptr.vmem [resolvable:$true] %s974_s27 }
  0xc4   : > { %s4739_s7 = scalar_lea.hbm %s5467_s20, %s3572_s5  ;;  %s4089_s11 = scalar_lea.hbm %s5467_s20, 512 }
  0xc5   : > { %s4085_s23 = scalar_lea.hbm %s4739_s7, 256  ;;  %p4090_p13 = scmp.lt.u32.totalorder %s4739_s7, %s5467_s20 }
  0xc6   : > { %p4086_p9 = scmp.ne.s32.totalorder %s4739_s7, %s4085_s23  ;;  %p4091_p12 = scmp.lt.u32.totalorder %s4089_s11, %s4085_s23 }
  0xc7   : > { %p4093_p2 = scmp.lt.u32.totalorder %s4085_s23, %s4739_s7 }
  0xc8   : > { %p4087_p6 = pnand %p4086_p9, %p4537_p4  ;;  %p4092_p0 = por %p4091_p12, %p4090_p13 }
  0xca   : > { %p4088_p10 = pneg %p4087_p6  ;;  %p4094_p1 = por %p4093_p2, %p4092_p0 }
  0xcc   : > { %p4095_p3 = pnand %p4094_p1, %p4088_p10 }
  0xce   : > { %4098 = shalt.err (!%p4095_p3)
}
  0xcf   : > { %s4099_s18 = scalar_lea.vmem %s4743_s27, 256  ;;  %s4376_s22 = smov [#allocation19]  }
  0xd0   : > { %p4100_p7 = scmp.ne.s32.totalorder %s4743_s27, %s4099_s18  ;;  %s4103_s1 = sshll.u32 %s4376_s22, 4  ;;  %s4104_s1 = int_to_ptr.vmem [resolvable:$false] %s4103_s1 }
  0xd1   : > { %s4105_s9 = scalar_lea.vmem %s4104_s1, 512  ;;  %p4106_p11 = scmp.lt.s32.totalorder %s4743_s27, %s4104_s1 }
  0xd2   : > { %p4101_p5 = pnand %p4100_p7, %p4537_p4  ;;  %p4107_p9 = scmp.lt.s32.totalorder %s4105_s9, %s4099_s18 }
  0xd4   : > { %p4102_p8 = pneg %p4101_p5  ;;  %p4108_p6 = por %p4107_p9, %p4106_p11 }
  0xd6   : > { %p4109_p13 = pnand %p4108_p6, %p4102_p8 }
  0xd8   : > { %4112 = shalt.err (!%p4109_p13)
}
  0xd9   : > { %s5433_s23 = smov 64   ;;  %s4378_s11 = smov 4  }
  0xda   : > { %3828 = dma.hbm_to_vmem [thread:$0]  (%p4537_p4), %s4739_s7, 256, %s4743_s27, %s5432_s2, %s5433_s23, %s5433_s23, %s4378_s11  }
  0xdb   : > { %s5468_s22 = sld [smem:[#allocation34_spill]]  ;;  %s688_s9 = scalar_lea.vmem [#allocation2], %s3393_s29 }
  0xdc   : > { %s695_s3 = sshll.u32 %s688_s9, 4  ;;  %s5469_s20 = sld [smem:[#allocation37_spill]]  ;;  %s4781_s3 = int_to_ptr.vmem [resolvable:$true] %s695_s3 }
  0xdd   : > { %s685_s7 = scalar_lea.sflag [#allocation3], %s4548_s25 }
  0xe1   : > { %s4777_s1 = scalar_lea.hbm %s5468_s22, %s3572_s5  ;;  %s4117_s18 = scalar_lea.hbm %s5468_s22, 512 }
  0xe2   : > { %s4787_s16 = scalar_lea.hbm %s5469_s20, %s4586_s13  ;;  %s4113_s27 = scalar_lea.hbm %s4777_s1, 256 }
  0xe3   : > { %p4114_p10 = scmp.ne.s32.totalorder %s4777_s1, %s4113_s27  ;;  %p4118_p2 = scmp.lt.u32.totalorder %s4777_s1, %s5468_s22 }
  0xe4   : > { %p4119_p1 = scmp.lt.u32.totalorder %s4117_s18, %s4113_s27  ;;  %p4121_p7 = scmp.lt.u32.totalorder %s4113_s27, %s4777_s1 }
  0xe5   : > { %p4115_p12 = pnand %p4114_p10, %p4537_p4 }
  0xe6   : > { %p4120_p3 = por %p4119_p1, %p4118_p2 }
  0xe7   : > { %p4116_p0 = pneg %p4115_p12 }
  0xe8   : > { %p4122_p5 = por %p4121_p7, %p4120_p3 }
  0xea   : > { %p4123_p8 = pnand %p4122_p5, %p4116_p0 }
  0xec   : > { %4126 = shalt.err (!%p4123_p8)
}
  0xed   : > { %s4127_s15 = scalar_lea.vmem %s4781_s3, 256  ;;  %s4379_s19 = smov [#allocation2]  }
  0xee   : > { %p4128_p11 = scmp.ne.s32.totalorder %s4781_s3, %s4127_s15  ;;  %s4131_s9 = sshll.u32 %s4379_s19, 4  ;;  %s4132_s9 = int_to_ptr.vmem [resolvable:$false] %s4131_s9 }
  0xef   : > { %s4133_s2 = scalar_lea.vmem %s4132_s9, 512  ;;  %p4134_p13 = scmp.lt.s32.totalorder %s4781_s3, %s4132_s9 }
  0xf0   : > { %p4129_p9 = pnand %p4128_p11, %p4537_p4  ;;  %p4135_p10 = scmp.lt.s32.totalorder %s4133_s2, %s4127_s15 }
  0xf2   : > { %p4130_p6 = pneg %p4129_p9  ;;  %p4136_p12 = por %p4135_p10, %p4134_p13 }
  0xf4   : > { %p4137_p2 = pnand %p4136_p12, %p4130_p6 }
  0xf6   : > { %4140 = shalt.err (!%p4137_p2)
}
  0xf7   : > { %3817 = dma.hbm_to_vmem [thread:$0]  (%p4537_p4), %s4777_s1, 256, %s4781_s3, %s685_s7, %s5433_s23, %s5433_s23, %s4378_s11  }
  0xf8   : > { %s734_s27 = scalar_lea.vmem [#allocation6], %s4583_s12  ;;  %s4818_s0 = sshll.u32 %s4548_s25, 5 }
  0xf9   : > { %s741_s5 = sshll.u32 %s734_s27, 4  ;;  %s4141_s18 = scalar_lea.hbm %s4787_s16, 32  ;;  %s4820_s5 = int_to_ptr.vmem [resolvable:$true] %s741_s5 }
  0xfa   : > { %p4142_p0 = scmp.ne.s32.totalorder %s4787_s16, %s4141_s18  ;;  %s4145_s19 = scalar_lea.hbm %s5469_s20, 64 }
  0xfb   : > { %p4146_p7 = scmp.lt.u32.totalorder %s4787_s16, %s5469_s20  ;;  %p4147_p5 = scmp.lt.u32.totalorder %s4145_s19, %s4141_s18 }
  0xfc   : > { %p4143_p1 = pnand %p4142_p0, %p4537_p4  ;;  %p4149_p11 = scmp.lt.u32.totalorder %s4141_s18, %s4787_s16 }
  0xfd   : > { %p4148_p8 = por %p4147_p5, %p4146_p7 }
  0xfe   : > { %p4144_p3 = pneg %p4143_p1 }
  0xff   : > { %p4150_p9 = por %p4149_p11, %p4148_p8 }
 0x101   : > { %p4151_p6 = pnand %p4150_p9, %p4144_p3 }
 0x103   : > { %4154 = shalt.err (!%p4151_p6)
}
 0x104   : > { %s4155_s3 = scalar_lea.vmem %s4820_s5, 32  ;;  %s4380_s1 = smov [#allocation6]  }
 0x105   : > { %p4156_p13 = scmp.ne.s32.totalorder %s4820_s5, %s4155_s3  ;;  %s4159_s7 = sshll.u32 %s4380_s1, 4  ;;  %s4160_s7 = int_to_ptr.vmem [resolvable:$false] %s4159_s7 }
 0x106   : > { %s4161_s27 = scalar_lea.vmem %s4160_s7, 64  ;;  %p4162_p2 = scmp.lt.s32.totalorder %s4820_s5, %s4160_s7 }
 0x107   : > { %p4157_p10 = pnand %p4156_p13, %p4537_p4  ;;  %p4163_p0 = scmp.lt.s32.totalorder %s4161_s27, %s4155_s3 }
 0x109   : > { %p4158_p12 = pneg %p4157_p10  ;;  %p4164_p1 = por %p4163_p0, %p4162_p2 }
 0x10b   : > { %p4165_p7 = pnand %p4164_p1, %p4158_p12 }
 0x10d   : > { %4168 = shalt.err (!%p4165_p7)
}
 0x10e   : > { %s5470_s18 = smov 1   ;;  %s5471_s29 = smov 16  }
 0x10f   : > { %s5472_s15 = scalar_lea.sflag [#allocation5], %s4551_s26  ;;  %s4849_s19 = sshll.u32 %s4367_s30, 9 }
 0x110   : > { %3819 = dma.hbm_to_vmem [thread:$0]  (%p4537_p4), %s4787_s16, 32, %s4820_s5, %s5472_s15, %s5471_s29, %s5471_s29, %s5470_s18  }
 0x111   : > { %s784_s9 = scalar_lea.vmem [#allocation9], %s4818_s0  ;;  %s5473_s8 = sld [smem:[#allocation40_spill]] }
 0x112   : > { %s791_s2 = sshll.u32 %s784_s9, 4  ;;  %s4858_s2 = int_to_ptr.vmem [resolvable:$true] %s791_s2 }
 0x117   : > { %s4856_s7 = scalar_lea.hbm %s5473_s8, %s4849_s19  ;;  %s4173_s15 = scalar_lea.hbm %s5473_s8, 1024 }
 0x118   : > { %s4169_s27 = scalar_lea.hbm %s4856_s7, 512  ;;  %p4174_p11 = scmp.lt.u32.totalorder %s4856_s7, %s5473_s8 }
 0x119   : > { %p4170_p3 = scmp.ne.s32.totalorder %s4856_s7, %s4169_s27  ;;  %p4175_p9 = scmp.lt.u32.totalorder %s4173_s15, %s4169_s27 }
 0x11a   : > { %p4177_p13 = scmp.lt.u32.totalorder %s4169_s27, %s4856_s7 }
 0x11b   : > { %p4171_p5 = pnand %p4170_p3, %p4537_p4  ;;  %p4176_p6 = por %p4175_p9, %p4174_p11 }
 0x11d   : > { %p4172_p8 = pneg %p4171_p5  ;;  %p4178_p10 = por %p4177_p13, %p4176_p6 }
 0x11f   : > { %p4179_p12 = pnand %p4178_p10, %p4172_p8 }
 0x121   : > { %4182 = shalt.err (!%p4179_p12)
}
 0x122   : > { %s4183_s3 = scalar_lea.vmem %s4858_s2, 512  ;;  %s4381_s1 = smov [#allocation9]  }
 0x123   : > { %p4184_p2 = scmp.ne.s32.totalorder %s4858_s2, %s4183_s3  ;;  %s4187_s16 = sshll.u32 %s4381_s1, 4  ;;  %s4188_s16 = int_to_ptr.vmem [resolvable:$false] %s4187_s16 }
 0x124   : > { %s4189_s23 = scalar_lea.vmem %s4188_s16, 1024  ;;  %p4190_p7 = scmp.lt.s32.totalorder %s4858_s2, %s4188_s16 }
 0x125   : > { %p4185_p0 = pnand %p4184_p2, %p4537_p4  ;;  %p4191_p3 = scmp.lt.s32.totalorder %s4189_s23, %s4183_s3 }
 0x127   : > { %p4186_p1 = pneg %p4185_p0  ;;  %p4192_p5 = por %p4191_p3, %p4190_p7 }
 0x129   : > { %p4193_p11 = pnand %p4192_p5, %p4186_p1 }
 0x12b   : > { %4196 = shalt.err (!%p4193_p11)
}
 0x12c   : > { %s5474_s27 = smov 64   ;;  %s5475_s5 = scalar_lea.sflag [#allocation8], %s4551_s26 }
 0x12d   : > { %3821 = dma.hbm_to_vmem [thread:$0]  (%p4537_p4), %s4856_s7, 512, %s4858_s2, %s5475_s5, %s5474_s27, %s5474_s27, %s4378_s11  }
 0x12e   : > { %s5476_s10 = sld [smem:[#allocation42_spill]]  ;;  %s826_s1 = scalar_lea.vmem [#allocation12], %s4818_s0 }
 0x12f   : > { %s833_s16 = sshll.u32 %s826_s1, 4  ;;  %s4899_s20 = scalar_lea.hbm %s5405_s14, %s4849_s19  ;;  %s4893_s16 = int_to_ptr.vmem [resolvable:$true] %s833_s16 }
 0x134   : > { %s4890_s3 = scalar_lea.hbm %s5476_s10, %s4849_s19  ;;  %s4201_s5 = scalar_lea.hbm %s5476_s10, 1024 }
 0x135   : > { %s4197_s22 = scalar_lea.hbm %s4890_s3, 512  ;;  %p4202_p13 = scmp.lt.u32.totalorder %s4890_s3, %s5476_s10 }
 0x136   : > { %p4198_p8 = scmp.ne.s32.totalorder %s4890_s3, %s4197_s22  ;;  %p4203_p10 = scmp.lt.u32.totalorder %s4201_s5, %s4197_s22 }
 0x137   : > { %p4205_p2 = scmp.lt.u32.totalorder %s4197_s22, %s4890_s3 }
 0x138   : > { %p4199_p9 = pnand %p4198_p8, %p4537_p4  ;;  %p4204_p12 = por %p4203_p10, %p4202_p13 }
 0x13a   : > { %p4200_p6 = pneg %p4199_p9  ;;  %p4206_p0 = por %p4205_p2, %p4204_p12 }
 0x13c   : > { %p4207_p1 = pnand %p4206_p0, %p4200_p6 }
 0x13e   : > { %4210 = shalt.err (!%p4207_p1)
}
 0x13f   : > { %s4211_s8 = scalar_lea.vmem %s4893_s16, 512  ;;  %s4382_s19 = smov [#allocation12]  }
 0x140   : > { %p4212_p7 = scmp.ne.s32.totalorder %s4893_s16, %s4211_s8  ;;  %s4215_s1 = sshll.u32 %s4382_s19, 4  ;;  %s4216_s1 = int_to_ptr.vmem [resolvable:$false] %s4215_s1 }
 0x141   : > { %s4217_s23 = scalar_lea.vmem %s4216_s1, 1024  ;;  %p4218_p11 = scmp.lt.s32.totalorder %s4893_s16, %s4216_s1 }
 0x142   : > { %p4213_p3 = pnand %p4212_p7, %p4537_p4  ;;  %p4219_p8 = scmp.lt.s32.totalorder %s4217_s23, %s4211_s8 }
 0x144   : > { %p4214_p5 = pneg %p4213_p3  ;;  %p4220_p9 = por %p4219_p8, %p4218_p11 }
 0x146   : > { %p4221_p13 = pnand %p4220_p9, %p4214_p5 }
 0x148   : > { %4224 = shalt.err (!%p4221_p13)
}
 0x149   : > { %s5477_s22 = scalar_lea.sflag [#allocation11], %s4551_s26  ;;  %s882_s2 = scalar_lea.vmem [#allocation15], %s4818_s0 }
 0x14a   : > { %3823 = dma.hbm_to_vmem [thread:$0]  (%p4537_p4), %s4890_s3, 512, %s4893_s16, %s5477_s22, %s5474_s27, %s5474_s27, %s4378_s11  }
 0x14b   : > { %s889_s7 = sshll.u32 %s882_s2, 4  ;;  %s4934_s9 = scalar_lea.hbm %s5408_s17, %s4586_s13  ;;  %s4928_s7 = int_to_ptr.vmem [resolvable:$true] %s889_s7 }
 0x14c   : > { %s4225_s8 = scalar_lea.hbm %s4899_s20, 512  ;;  %s4229_s23 = scalar_lea.hbm %s5405_s14, 1024 }
 0x14d   : > { %p4226_p6 = scmp.ne.s32.totalorder %s4899_s20, %s4225_s8  ;;  %p4230_p2 = scmp.lt.u32.totalorder %s4899_s20, %s5405_s14 }
 0x14e   : > { %p4231_p0 = scmp.lt.u32.totalorder %s4229_s23, %s4225_s8  ;;  %p4233_p7 = scmp.lt.u32.totalorder %s4225_s8, %s4899_s20 }
 0x14f   : > { %p4227_p10 = pnand %p4226_p6, %p4537_p4 }
 0x150   : > { %p4232_p1 = por %p4231_p0, %p4230_p2 }
 0x151   : > { %p4228_p12 = pneg %p4227_p10 }
 0x152   : > { %p4234_p3 = por %p4233_p7, %p4232_p1 }
 0x154   : > { %p4235_p5 = pnand %p4234_p3, %p4228_p12 }
 0x156   : > { %4238 = shalt.err (!%p4235_p5)
}
 0x157   : > { %s4239_s13 = scalar_lea.vmem %s4928_s7, 512  ;;  %s4383_s0 = smov [#allocation15]  }
 0x158   : > { %p4240_p11 = scmp.ne.s32.totalorder %s4928_s7, %s4239_s13  ;;  %s4243_s16 = sshll.u32 %s4383_s0, 4  ;;  %s4244_s16 = int_to_ptr.vmem [resolvable:$false] %s4243_s16 }
 0x159   : > { %s4245_s10 = scalar_lea.vmem %s4244_s16, 1024  ;;  %p4246_p13 = scmp.lt.s32.totalorder %s4928_s7, %s4244_s16 }
 0x15a   : > { %p4241_p8 = pnand %p4240_p11, %p4537_p4  ;;  %p4247_p6 = scmp.lt.s32.totalorder %s4245_s10, %s4239_s13 }
 0x15c   : > { %p4242_p9 = pneg %p4241_p8  ;;  %p4248_p10 = por %p4247_p6, %p4246_p13 }
 0x15e   : > { %p4249_p2 = pnand %p4248_p10, %p4242_p9 }
 0x160   : > { %4252 = shalt.err (!%p4249_p2)
}
 0x161   : > { %s5478_s22 = scalar_lea.sflag [#allocation14], %s4551_s26  ;;  %s932_s2 = scalar_lea.vmem [#allocation18], %s4583_s12 }
 0x162   : > { %3825 = dma.hbm_to_vmem [thread:$0]  (%p4537_p4), %s4899_s20, 512, %s4928_s7, %s5478_s22, %s5474_s27, %s5474_s27, %s4378_s11  }
 0x163   : > { %s939_s5 = sshll.u32 %s932_s2, 4  ;;  %s5479_s15 = sshll.u32 %s4367_s30, 4  ;;  %s4963_s5 = int_to_ptr.vmem [resolvable:$true] %s939_s5 }
 0x164   : > { %s4970_s1 = scalar_lea.hbm %s5412_s21, %s5479_s15  ;;  %s4253_s23 = scalar_lea.hbm %s4934_s9, 32 }
 0x165   : > { %p4254_p12 = scmp.ne.s32.totalorder %s4934_s9, %s4253_s23  ;;  %s4257_s0 = scalar_lea.hbm %s5408_s17, 64 }
 0x166   : > { %p4258_p7 = scmp.lt.u32.totalorder %s4934_s9, %s5408_s17  ;;  %p4259_p3 = scmp.lt.u32.totalorder %s4257_s0, %s4253_s23 }
 0x167   : > { %p4255_p0 = pnand %p4254_p12, %p4537_p4  ;;  %p4261_p11 = scmp.lt.u32.totalorder %s4253_s23, %s4934_s9 }
 0x168   : > { %p4260_p5 = por %p4259_p3, %p4258_p7 }
 0x169   : > { %p4256_p1 = pneg %p4255_p0 }
 0x16a   : > { %p4262_p8 = por %p4261_p11, %p4260_p5 }
 0x16c   : > { %p4263_p9 = pnand %p4262_p8, %p4256_p1 }
 0x16e   : > { %4266 = shalt.err (!%p4263_p9)
}
 0x16f   : > { %s4267_s11 = scalar_lea.vmem %s4963_s5, 32  ;;  %s4384_s27 = smov [#allocation18]  }
 0x170   : > { %p4268_p13 = scmp.ne.s32.totalorder %s4963_s5, %s4267_s11  ;;  %s4271_s7 = sshll.u32 %s4384_s27, 4  ;;  %s4272_s7 = int_to_ptr.vmem [resolvable:$false] %s4271_s7 }
 0x171   : > { %s4273_s16 = scalar_lea.vmem %s4272_s7, 64  ;;  %p4274_p2 = scmp.lt.s32.totalorder %s4963_s5, %s4272_s7 }
 0x172   : > { %p4269_p6 = pnand %p4268_p13, %p4537_p4  ;;  %p4275_p12 = scmp.lt.s32.totalorder %s4273_s16, %s4267_s11 }
 0x174   : > { %p4270_p10 = pneg %p4269_p6  ;;  %p4276_p0 = por %p4275_p12, %p4274_p2 }
 0x176   : > { %p4277_p7 = pnand %p4276_p0, %p4270_p10 }
 0x178   : > { %4280 = shalt.err (!%p4277_p7)
}
 0x179   : > { %s5480_s10 = scalar_lea.sflag [#allocation17], %s4551_s26  ;;  %s987_s22 = scalar_lea.vmem [#allocation21], %s4548_s25 }
 0x17a   : > { %3827 = dma.hbm_to_vmem [thread:$0]  (%p4537_p4), %s4934_s9, 32, %s4963_s5, %s5480_s10, %s5471_s29, %s5471_s29, %s5470_s18  }
 0x17b   : > { %s994_s2 = sshll.u32 %s987_s22, 4  ;;  %s4281_s15 = scalar_lea.hbm %s4970_s1, 16  ;;  %s995_s2 = int_to_ptr.vmem [resolvable:$true] %s994_s2 }
 0x17c   : > { %p4282_p1 = scmp.ne.s32.totalorder %s4970_s1, %s4281_s15  ;;  %s4285_s23 = scalar_lea.hbm %s5412_s21, 32 }
 0x17d   : > { %p4286_p11 = scmp.lt.u32.totalorder %s4970_s1, %s5412_s21  ;;  %p4287_p8 = scmp.lt.u32.totalorder %s4285_s23, %s4281_s15 }
 0x17e   : > { %p4283_p3 = pnand %p4282_p1, %p4537_p4  ;;  %p4289_p13 = scmp.lt.u32.totalorder %s4281_s15, %s4970_s1 }
 0x17f   : > { %p4288_p9 = por %p4287_p8, %p4286_p11 }
 0x180   : > { %p4284_p5 = pneg %p4283_p3 }
 0x181   : > { %p4290_p6 = por %p4289_p13, %p4288_p9 }
 0x183   : > { %p4291_p10 = pnand %p4290_p6, %p4284_p5 }
 0x185   : > { %4294 = shalt.err (!%p4291_p10)
}
 0x186   : > { %s4295_s25 = scalar_lea.vmem %s995_s2, 16  ;;  %s4385_s18 = smov [#allocation21]  }
 0x187   : > { %p4296_p2 = scmp.ne.s32.totalorder %s995_s2, %s4295_s25  ;;  %s4299_s29 = sshll.u32 %s4385_s18, 4  ;;  %s4300_s29 = int_to_ptr.vmem [resolvable:$false] %s4299_s29 }
 0x188   : > { %s4301_s9 = scalar_lea.vmem %s4300_s29, 32  ;;  %p4302_p7 = scmp.lt.s32.totalorder %s995_s2, %s4300_s29 }
 0x189   : > { %p4297_p12 = pnand %p4296_p2, %p4537_p4  ;;  %p4303_p1 = scmp.lt.s32.totalorder %s4301_s9, %s4295_s25 }
 0x18b   : > { %p4298_p0 = pneg %p4297_p12  ;;  %p4304_p3 = por %p4303_p1, %p4302_p7 }
 0x18d   : > { %p4305_p8 = pnand %p4304_p3, %p4298_p0 }
 0x18f   : > { %4308 = shalt.err (!%p4305_p8)
}
 0x190   : > { %s5481_s5 = scalar_lea.sflag [#allocation20], %s4551_s26 }
 0x191   : > { %3829 = dma.hbm_to_vmem [thread:$0]  (%p4537_p4), %s4970_s1, 16, %s995_s2, %s5481_s5  }
 0x192 PF: > { %p3428_p5 = scmp.ge.s32.totalorder %s4367_s30, 1  ;;  %p999_p11 = scmp.lt.s32.totalorder %s4367_s30, 3 }
 0x194   : > { %p1000_p9 = pnand %p3428_p5, %p999_p11 }
 0x195   : > { %s5021_s0 = sand.u32 (!%p1000_p9), 1, %s4359_s28   ;;  %p5482_p4 = scmp.ne.s32.totalorder (!%p1000_p9), %s5461_s6, 0 }
 0x196   : > { %1003 = sbr.rel (%p1000_p9) target bundleno = 5417 (0x1529), region = 108  ;;  %s3429_s20 = sshll.u32 (!%p1000_p9), %s5021_s0, 4 }
 0x197   : > { %s1006_s24 = scalar_lea.sflag (!%p1000_p9), [#allocation3], %s5021_s0  ;;  %s5027_s26 = scalar_lea.vmem (!%p1000_p9), [#allocation2], %s3429_s20 }
 0x19d   : > { %4326 = dma.done.wait (%p5482_p4), %s1006_s24, 256  }
 0x19e   : > { %4328 = vsyncadd (%p5482_p4), %s1006_s24, 4294967040  ;;  %s5034_s30 = sand.u32 1, %s4522_s4   ;;  %s1017_s12 = scalar_lea.vmem [#allocation4], %s5021_s0 }
 0x19f   : > { %s1015_s1 = scalar_lea.sflag [#allocation5], %s5034_s30 }
 0x1a0   : > { %4330 = dma.done.wait (%p5482_p4), %s1015_s1, 48  }
 0x1a1   : > { %4332 = vsyncadd (%p5482_p4), %s1015_s1, 4294967248  ;;  %s5043_s11 = sshll.u32 %s5021_s0, 1  ;;  %s1032_s7 = scalar_lea.sflag [#allocation8], %s5034_s30 }
 0x1a2   : > { %s1026_s27 = scalar_lea.vmem [#allocation6], %s5043_s11  ;;  %s1035_s16 = scalar_lea.vmem [#allocation7], %s5043_s11 }
 0x1a3   : > { %4334 = dma.done.wait (%p5482_p4), %s1032_s7, 544  }
 0x1a4   : > { %4336 = vsyncadd (%p5482_p4), %s1032_s7, 4294966752  ;;  %s3432_s10 = sshll.u32 %s5021_s0, 5  ;;  %s1050_s2 = scalar_lea.sflag [#allocation11], %s5034_s30 }
 0x1a5   : > { %s5053_s22 = scalar_lea.vmem [#allocation9], %s3432_s10  ;;  %s1053_s15 = scalar_lea.vmem [#allocation10], %s5043_s11 }
 0x1a6   : > { %4338 = dma.done.wait (%p5482_p4), %s1050_s2, 544  }
 0x1a7   : > { %4340 = vsyncadd (%p5482_p4), %s1050_s2, 4294966752  ;;  %s5061_s8 = scalar_lea.vmem [#allocation12], %s3432_s10  ;;  %s1068_s19 = scalar_lea.sflag [#allocation14], %s5034_s30 }
 0x1a8   : > { %s1071_s23 = scalar_lea.vmem [#allocation13], %s5043_s11 }
 0x1a9   : > { %4342 = dma.done.wait (%p5482_p4), %s1068_s19, 544  }
 0x1aa   : > { %4344 = vsyncadd (%p5482_p4), %s1068_s19, 4294966752  ;;  %s5069_s3 = scalar_lea.vmem [#allocation15], %s3432_s10  ;;  %s1086_s13 = scalar_lea.sflag [#allocation17], %s5034_s30 }
 0x1ab   : > { %s1089_s25 = scalar_lea.vmem [#allocation16], %s5043_s11 }
 0x1ac   : > { %4346 = dma.done.wait (%p5482_p4), %s1086_s13, 64  }
 0x1ad   : > { %4348 = vsyncadd (%p5482_p4), %s1086_s13, 4294967232  ;;  %s1098_s18 = scalar_lea.vmem [#allocation18], %s5043_s11  ;;  %s1104_s29 = scalar_lea.sflag [#allocation20], %s5034_s30 }
 0x1ae   : > { %s5081_s9 = scalar_lea.vmem [#allocation19], %s3429_s20 }
 0x1af   : > { %4350 = dma.done.wait (%p5482_p4), %s1104_s29, 272  }
 0x1b0   : > { %4352 = vsyncadd (%p5482_p4), %s1104_s29, 4294967024  ;;  %p1273_p13 = scmp.lt.s32.totalorder %s4522_s4, 1  ;;  %v4386_v0 = vmov 0.0   ;;  %vm4387_vm0 = vmmov 0   ;;  %s5483_s24 = sld [smem:[#allocation32_spill]]  ;;  %v3881_v1 = vld [vmem:[%s5027_s26] sm:$0xff]  }
 0x1b1   : > { %3649 = vmatprep.subr.bf16.mxu0 %v4386_v0  ;;  %3653 = vmatprep.mubr.msk.bf16.mxu0 %vm4387_vm0, %v4386_v0  ;;  %v3882_v2 = vld [vmem:[%s5027_s26 + $0x8] sm:$0xff]   ;;  %vm1346_vm1 = vcmask 261120   ;;  %s5484_s2 = sld [smem:[#allocation47_spill]]  ;;  %v3454_v10 = vld [vmem:[%s1017_s12] ss:$0 sm:$0xff]  ;;  %vm1748_vm2 = vcmask 1043456  }
 0x1b2   : > { %s5499_s4 = smov (!%p1273_p13, %s4522_s4), 1  ;;  %3657 = vmatprep.subr.bf16.mxu1 %v4386_v0  ;;  %3661 = vmatprep.mubr.msk.bf16.mxu1 %vm4387_vm0, %v4386_v0  ;;  %v3887_v17 = vld [vmem:[%s5053_s22] sm:$0xff]   ;;  %v3888_v19 = vld [vmem:[%s5053_s22 + $0x8] sm:$0xff]   ;;  %v3462_v20 = vld [vmem:[%s1035_s16] ss:$0 sm:$0xff]  ;;  %vm1720_vm3 = vcmask 64512  }
 0x1b3   : > { %s3583_s6 = sshll.u32 %s5499_s4, 4  ;;  %3650 = vmatpush3.bf16.msra.mxu0 %v3881_v1  ;;  %s3586_s1 = sshll.u32 %s5499_s4, 6  ;;  %v3458_v32 = vld [vmem:[%s1026_s27] ss:$0 sm:$0xff]  ;;  %v3466_v35 = vld [vmem:[%s1053_s15] ss:$0 sm:$0xff] }
 0x1b4   : > { %3651 = vmatprep.subr.bf16.mxu0 %v4386_v0  ;;  %s3584_s26 = sshll.u32 %s5499_s4, 5  ;;  %s5175_s12 = sshll.u32 %s5499_s4, 1  ;;  %vm2042_vm4 = vcmask 523264   ;;  %vm2905_vm5 = vcmask 1041409   ;;  %vm2963_vm6 = vcmask 25600  }
 0x1b5   : > { %s5488_s29 = sld [smem:[#allocation44_spill]]  ;;  %s5491_s13 = sld [smem:[#allocation49_spill]] }
 0x1b6   : > { %s1277_s30 = scalar_lea.vmem %s5483_s24, %s3583_s6  ;;  %s5485_s6 = sld [smem:[#allocation36_spill]] }
 0x1b7   : > { %v1318_v3 = vld [vmem:[%s1277_s30] sm:$0xff]  ;;  %v1319_v4 = vld [vmem:[%s1277_s30 + $0x8] sm:$0xff]  ;;  %3652 = vmatpush3.bf16.msra.mxu0 %v3882_v2  ;;  %s5108_s19 = scalar_lea.vmem %s5484_s2, %s3586_s1  ;;  %s5486_s30 = sld [smem:[#allocation38_spill]] }
 0x1b8   : > { %v1322_v5 = vpack.c.bf16 %v1319_v4, %v1318_v3  ;;  %3665 = vmatprep.subr.bf16.mxu0 %v4386_v0  ;;  %s5487_s2 = sld [smem:[#allocation33_spill]]  ;;  %s1115_s11 = scalar_lea.vmem [#allocation21], %s5021_s0 }
 0x1ba   : > { %3654 = vmatmul.mubr.msk.bf16.vlgmr.msra.gmra.mrb[0].mxu0 %vm1346_vm1, %v1322_v5 }
 0x1bb   : > { %3669 = vmatprep.mubr.msk.bf16.mxu0 %vm4387_vm0, %v4386_v0 }
 0x1bc   : > { %s5118_s5 = scalar_lea.vmem %s5485_s6, %s3584_s26  ;;  %s5224_s6 = scalar_lea.vmem %s5488_s29, %s5175_s12 }
 0x1bd   : > { %s5123_s1 = scalar_lea.vmem %s5486_s30, %s3584_s26  ;;  %v3883_v6 = vld [vmem:[%s5118_s5] sm:$0xff]   ;;  %v3885_v8 = vld [vmem:[%s5118_s5 + $0x8] sm:$0xff]   ;;  %s5489_s30 = sld [smem:[#allocation45_spill]] }
 0x1be   : > { %v3884_v7 = vld [vmem:[%s5123_s1] sm:$0xff]   ;;  %3658 = vmatpush3.bf16.msra.mxu1 %v3883_v6  ;;  %v3886_v9 = vld [vmem:[%s5123_s1 + $0x8] sm:$0xff]   ;;  %s1281_s26 = scalar_lea.vmem %s5487_s2, %s5175_s12  ;;  %s5271_s29 = scalar_lea.vmem %s5491_s13, %s5175_s12 }
 0x1bf   : > { %3666 = vmatpush3.bf16.msra.mxu0 %v3884_v7  ;;  %3659 = vmatprep.subr.bf16.mxu1 %v4386_v0  ;;  %v5181_v51 = vld [vmem:[%s1281_s26] ss:$0 sm:$0xff]  ;;  %v5183_v53 = vld [vmem:[%s1281_s26 + $0x1] ss:$0 sm:$0xff] }
 0x1c0   : > { %3667 = vmatprep.subr.bf16.mxu0 %v4386_v0 }
 0x1c2   : > { %3660 = vmatpush3.bf16.msra.mxu1 %v3885_v8 }
 0x1c3   : > { %3668 = vmatpush3.bf16.msra.mxu0 %v3886_v9  ;;  %3673 = vmatprep.subr.bf16.mxu1 %v4386_v0  ;;  %s5231_s7 = scalar_lea.vmem %s5489_s30, %s5175_s12 }
 0x1c4   : > { %3681 = vmatprep.subr.bf16.mxu0 %v4386_v0 }
 0x28d   : > { %v1384_v11 = vpop.f32.mrb[0].mxu0 }
 0x28e   : > { %v3655_v12 = vpop.f32.mrb[1].mxu0  ;;  %v5135_v14 = vadd.f32 %v3454_v10, %v1384_v11 }
 0x28f   : > { %v1387_v13 = vpop.f32.mrb[2].mxu0 }
 0x290   : > { %v5137_v15 = vadd.f32 %v3454_v10, %v1387_v13  ;;  %v3656_v16 = vpop.f32.mrb[3].mxu0 }
 0x292   : > { %v1429_v18 = vpack.c.bf16 %v5137_v15, %v5135_v14 }
 0x294   : > { %3662 = vmatmul.mubr.msk.bf16.vlgmr.msra.gmra.mrb[0].mxu1 %vm1346_vm1, %v1429_v18  ;;  %3670 = vmatmul.mubr.msk.bf16.vlgmr.msra.gmra.mrb[4].mxu0 %vm1346_vm1, %v1429_v18 }
 0x295   : > { %3674 = vmatpush3.bf16.msra.mxu1 %v3887_v17  ;;  %3677 = vmatprep.mubr.msk.bf16.mxu1 %vm4387_vm0, %v4386_v0 }
 0x296   : > { %3675 = vmatprep.subr.bf16.mxu1 %v4386_v0  ;;  %3683 = vmatprep.mubr.msk.bf16.mxu0 %vm4387_vm0, %v4386_v0 }
 0x299   : > { %3676 = vmatpush3.bf16.msra.mxu1 %v3888_v19 }
 0x29a   : > { %3687 = vmatprep.subr.bf16.mxu1 %v4386_v0 }
 0x29c   : > { %3678 = vmatmul.mubr.msk.bf16.vlgmr.msra.gmra.mrb[4].mxu1 %vm1346_vm1, %v1429_v18 }
 0x29d   : > { %3689 = vmatprep.mubr.msk.bf16.mxu1 %vm4387_vm0, %v4386_v0 }
 0x367   : > { %v1485_v21 = vpop.f32.mrb[0].mxu1  ;;  %v1544_v22 = vpop.f32.mrb[4].mxu0 }
 0x368   : > { %v1545_v23 = vadd.f32 %v3462_v20, %v1544_v22  ;;  %v3663_v24 = vpop.f32.mrb[1].mxu1  ;;  %v3671_v25 = vpop.f32.mrb[5].mxu0  ;;  %v1486_v36 = vadd.f32 %v3458_v32, %v1485_v21  ;;  %v3889_v22 = vld [vmem:[%s5061_s8] sm:$0xff]  }
 0x369   : > { %v1488_v26 = vpop.f32.mrb[2].mxu1  ;;  %v1547_v27 = vpop.f32.mrb[6].mxu0 }
 0x36a   : > { %v1612_v28 = vpack.c.bf16 %v1545_v23, %v1545_v23  ;;  %v1548_v29 = vadd.f32 %v3462_v20, %v1547_v27  ;;  %v3664_v30 = vpop.f32.mrb[3].mxu1  ;;  %v3672_v31 = vpop.f32.mrb[7].mxu0  ;;  %v1489_v39 = vadd.f32 %v3458_v32, %v1488_v26  ;;  %v1610_v43 = vpack.c.bf16 %v1486_v36, %v1486_v36  ;;  %v3890_v23 = vld [vmem:[%s5061_s8 + $0x8] sm:$0xff]  }
 0x36c   : > { %v1632_v33 = vsel %vm1346_vm1, %v1612_v28, 0  ;;  %v1613_v34 = vpack.c.bf16 %v1548_v29, %v1548_v29  ;;  %v1611_v47 = vpack.c.bf16 %v1489_v39, %v1489_v39 }
 0x36d   : > { %3682 = vmatpush3.bf16.xpose.msra.mxu0 %v1632_v33  ;;  %v3476_v33 = vld [vmem:[%s1071_s23] ss:$0 sm:$0xff] }
 0x36e   : > { %v1678_v37 = vsel %vm1346_vm1, %v1613_v34, 0  ;;  %3693 = vmatprep.subr.bf16.mxu0 %v4386_v0 }
 0x36f   : > { %v1603_v38 = vpop.f32.mrb[4].mxu1  ;;  %3688 = vmatpush3.bf16.xpose.msra.mxu1 %v1678_v37 }
 0x370   : > { %v1604_v40 = vadd.f32 %v3466_v35, %v1603_v38  ;;  %v3679_v41 = vpop.f32.mrb[5].mxu1  ;;  %3699 = vmatprep.subr.bf16.mxu1 %v4386_v0 }
 0x371   : > { %v1606_v42 = vpop.f32.mrb[6].mxu1 }
 0x372   : > { %v1614_v44 = vpack.c.bf16 %v1604_v40, %v1604_v40  ;;  %v1607_v45 = vadd.f32 %v3466_v35, %v1606_v42  ;;  %v3680_v46 = vpop.f32.mrb[7].mxu1 }
 0x374   : > { %v1750_v48 = vsel %vm1748_vm2, %v1614_v44, 0  ;;  %v1615_v49 = vpack.c.bf16 %v1607_v45, %v1607_v45  ;;  %3684 = vmatmul.mubr.msk.bf16.vlgmr.msra.gmra.mrb[8].mxu0 %vm1346_vm1, %v1610_v43 }
 0x375   : > { %3694 = vmatpush3.bf16.msra.mxu0 %v1750_v48  ;;  %3695 = vmatprep.mubr.msk.bf16.mxu0 %vm4387_vm0, %v4386_v0 }
 0x376   : > { %v1796_v50 = vsel %vm1748_vm2, %v1615_v49, 0  ;;  %3690 = vmatmul.mubr.msk.bf16.vlgmr.msra.gmra.mrb[8].mxu1 %vm1346_vm1, %v1611_v47  ;;  %3705 = vmatprep.subr.bf16.mxu0 %v4386_v0 }
 0x377   : > { %3700 = vmatpush3.bf16.msra.mxu1 %v1796_v50  ;;  %3701 = vmatprep.mubr.msk.bf16.mxu1 %vm4387_vm0, %v4386_v0 }
 0x378   : > { %3713 = vmatprep.subr.bf16.mxu1 %v4386_v0 }
 0x447   : > { %v1668_v52 = vpop.f32.mrb[8].mxu0 }
 0x448   : > { %v1669_v54 = vadd.f32 %v5181_v51, %v1668_v52  ;;  %v3685_v55 = vpop.f32.mrb[9].mxu0 }
 0x449   : > { %v1671_v56 = vpop.f32.mrb[10].mxu0  ;;  %v1714_v57 = vpop.f32.mrb[8].mxu1  ;;  %v3892_v55 = vld [vmem:[%s5069_s3 + $0x8] sm:$0xff]  }
 0x44a   : > { %v1715_v58 = vadd.f32 %v5183_v53, %v1714_v57  ;;  %v3686_v59 = vpop.f32.mrb[11].mxu0  ;;  %v3691_v60 = vpop.f32.mrb[9].mxu1  ;;  %v1721_v61 = vsel %vm1720_vm3, %v1669_v54, -inf  ;;  %v3893_v56 = vld [vmem:[%s5108_s19] sm:$0xff]   ;;  %v3894_v57 = vld [vmem:[%s5108_s19 + $0x8] sm:$0xff]  }
 0x44b   : > { %v1717_v62 = vpop.f32.mrb[10].mxu1  ;;  %1722 = vmax.xlane.f32.xlu0 %v1721_v61 }
 0x44c   : > { %v3692_v63 = vpop.f32.mrb[11].mxu1  ;;  %v1724_v1 = vsel %vm1720_vm3, %v1715_v58, -inf }
 0x44f   : > { %1725 = vmax.xlane.f32.xlu0 %v1724_v1 }
 0x4d8   : > { %v1723_v2 = vpop.xlane.xlu0 %1722 }
 0x4d9   : > { %v1727_v3 = vsub.f32 %v1669_v54, %v1723_v2  ;;  %v3891_v54 = vld [vmem:[%s5069_s3] sm:$0xff]   ;;  %v3480_v2 = vld [vmem:[%s5224_s6] ss:$0 sm:$0xff] }
 0x4db   : > { %v1729_v4 = vmul.f32 1.442695, %v1727_v3 }
 0x4dc   : > { %v1726_v5 = vpop.xlane.xlu0 %1725 }
 0x4dd   : > { %3913 = vpow2.f32 %v1729_v4  ;;  %v1728_v6 = vsub.f32 %v1715_v58, %v1726_v5 }
 0x4df   : > { %v1731_v7 = vmul.f32 1.442695, %v1728_v6 }
 0x4e1   : > { %3915 = vpow2.f32 %v1731_v7  ;;  %v3481_v7 = vld [vmem:[%s5231_s7] ss:$0 sm:$0xff] }
 0x4e7   : > { %v3914_v8 = vpop.eup %3913 }
 0x4e8   : > { %v1733_v9 = vsel %vm1720_vm3, %v3914_v8, 0.0 }
 0x4e9   : > { %1734 = vadd.xlane.f32.xlu1 %v1733_v9 }
 0x4eb   : > { %v3916_v10 = vpop.eup %3915 }
 0x4ec   : > { %v1736_v11 = vsel %vm1720_vm3, %v3916_v10, 0.0 }
 0x4ed   : > { %1737 = vadd.xlane.f32.xlu1 %v1736_v11 }
 0x576   : > { %v1735_v12 = vpop.xlane.xlu1 %1734 }
 0x577   : > { %3917 = vrcp.f32 %v1735_v12  ;;  %v3895_v12 = vld [vmem:[%s5108_s19 + $0x10] sm:$0xff]  }
 0x57a   : > { %v1738_v13 = vpop.xlane.xlu1 %1737 }
 0x57b   : > { %3919 = vrcp.f32 %v1738_v13  ;;  %v3896_v13 = vld [vmem:[%s5108_s19 + $0x18] sm:$0xff]  }
 0x581   : > { %v3918_v16 = vpop.eup %3917 }
 0x582   : > { %v1741_v17 = vmul.f32 %v3918_v16, %v3914_v8  ;;  %v3482_v16 = vld [vmem:[%s1089_s25] ss:$0 sm:$0xff] }
 0x584   : > { %v1743_v18 = vpack.c.bf16 %v1741_v17, %v1741_v17 }
 0x585   : > { %v3920_v19 = vpop.eup %3919 }
 0x586   : > { %v1742_v20 = vmul.f32 %v3920_v19, %v3916_v10  ;;  %3696 = vmatmul.mubr.msk.bf16.vlgmr.msra.gmra.mrb[12].mxu0 %vm1720_vm3, %v1743_v18 }
 0x587   : > { %3709 = vmatprep.mubr.msk.bf16.mxu0 %vm4387_vm0, %v4386_v0  ;;  %3706 = vmatpush3.bf16.msra.mxu0 %v3889_v22 }
 0x588   : > { %v1744_v21 = vpack.c.bf16 %v1742_v20, %v1742_v20  ;;  %3707 = vmatprep.subr.bf16.mxu0 %v4386_v0 }
 0x58a   : > { %3702 = vmatmul.mubr.msk.bf16.vlgmr.msra.gmra.mrb[12].mxu1 %vm1720_vm3, %v1744_v21 }
 0x58b   : > { %3717 = vmatprep.mubr.msk.bf16.mxu1 %vm4387_vm0, %v4386_v0  ;;  %3708 = vmatpush3.bf16.msra.mxu0 %v3890_v23 }
 0x58c   : > { %3721 = vmatprep.subr.bf16.mxu0 %v4386_v0  ;;  %3714 = vmatpush3.bf16.msra.mxu1 %v3891_v54 }
 0x58d   : > { %3715 = vmatprep.subr.bf16.mxu1 %v4386_v0 }
 0x590   : > { %3716 = vmatpush3.bf16.msra.mxu1 %v3892_v55 }
 0x591   : > { %3733 = vmatprep.subr.bf16.mxu1 %v4386_v0 }
 0x659   : > { %v1786_v24 = vpop.f32.mrb[12].mxu0 }
 0x65a   : > { %v3697_v25 = vpop.f32.mrb[13].mxu0 }
 0x65b   : > { %v1789_v26 = vpop.f32.mrb[14].mxu0 }
 0x65c   : > { %v3698_v27 = vpop.f32.mrb[15].mxu0  ;;  %v3486_v26 = vld [vmem:[%s1098_s18] ss:$0 sm:$0xff] }
 0x65d   : > { %v1832_v28 = vpop.f32.mrb[12].mxu1 }
 0x65e   : > { %v1838_v29 = vpack.c.bf16 %v1832_v28, %v1786_v24  ;;  %v3703_v30 = vpop.f32.mrb[13].mxu1 }
 0x65f   : > { %v1835_v31 = vpop.f32.mrb[14].mxu1 }
 0x660   : > { %v3704_v32 = vpop.f32.mrb[15].mxu1  ;;  %3710 = vmatmul.mubr.msk.bf16.vlgmr.msra.gmra.mrb[16].mxu0 %vm1346_vm1, %v1838_v29 }
 0x661   : > { %3729 = vmatprep.mubr.msk.bf16.mxu0 %vm4387_vm0, %v4386_v0  ;;  %3722 = vmatpush3.bf16.msra.mxu0 %v3893_v56 }
 0x662   : > { %3723 = vmatprep.subr.bf16.mxu0 %v4386_v0 }
 0x665   : > { %3724 = vmatpush3.bf16.msra.mxu0 %v3894_v57 }
 0x666   : > { %3725 = vmatprep.subr.bf16.mxu0 %v4386_v0 }
 0x669   : > { %3726 = vmatpush3.bf16.msra.mxu0 %v3895_v12 }
 0x66a   : > { %3727 = vmatprep.subr.bf16.mxu0 %v4386_v0 }
 0x66d   : > { %3728 = vmatpush3.bf16.msra.mxu0 %v3896_v13 }
 0x66e   : > { %3749 = vmatprep.subr.bf16.mxu0 %v4386_v0 }
 0x733   : > { %v1894_v34 = vpop.f32.mrb[16].mxu0 }
 0x734   : > { %v1895_v35 = vadd.f32 %v3476_v33, %v1894_v34  ;;  %v3711_v36 = vpop.f32.mrb[17].mxu0 }
 0x735   : > { %v1897_v37 = vpop.f32.mrb[18].mxu0 }
 0x736   : > { %v1898_v38 = vadd.f32 %v3476_v33, %v1897_v37  ;;  %v3712_v39 = vpop.f32.mrb[19].mxu0  ;;  %v1901_v40 = vadd.f32 %v1895_v35, %v5135_v14 }
 0x738   : > { %v1903_v41 = vsel %vm1346_vm1, %v1901_v40, 0.0  ;;  %v1902_v42 = vadd.f32 %v1898_v38, %v5137_v15 }
 0x739   : > { %1904 = vadd.xlane.f32.xlu0 %v1903_v41 }
 0x73a   : > { %v1906_v43 = vsel %vm1346_vm1, %v1902_v42, 0.0 }
 0x73b   : > { %1907 = vadd.xlane.f32.xlu1 %v1906_v43 }
 0x7c6   : > { %v1905_v44 = vpop.xlane.xlu0 %1904 }
 0x7c7   : > { %v1910_v45 = vmul.f32 0.03125, %v1905_v44 }
 0x7c8   : > { %v1908_v46 = vpop.xlane.xlu1 %1907 }
 0x7c9   : > { %v1912_v47 = vsub.f32 %v1901_v40, %v1910_v45  ;;  %v1911_v48 = vmul.f32 0.03125, %v1908_v46 }
 0x7cb   : > { %v1913_v49 = vsub.f32 %v1902_v42, %v1911_v48  ;;  %v1914_v50 = vmul.f32 %v1912_v47, %v1912_v47  ;;  %v3898_v48 = vld [vmem:[%s5053_s22 + $0x10] sm:$0xff]  }
 0x7cd   : > { %v1916_v14 = vsel %vm1346_vm1, %v1914_v50, 0.0  ;;  %v1915_v52 = vmul.f32 %v1913_v49, %v1913_v49  ;;  %v3900_v50 = vld [vmem:[%s5053_s22 + $0x18] sm:$0xff]  }
 0x7ce   : > { %1917 = vadd.xlane.f32.xlu0 %v1916_v14 }
 0x7cf   : > { %v1919_v15 = vsel %vm1346_vm1, %v1915_v52, 0.0 }
 0x7d0   : > { %1920 = vadd.xlane.f32.xlu1 %v1919_v15 }
 0x85b   : > { %v1918_v58 = vpop.xlane.xlu0 %1917 }
 0x85c   : > { %v1922_v59 = vmul.f32 0.03125, %v1918_v58 }
 0x85d   : > { %v1921_v60 = vpop.xlane.xlu1 %1920 }
 0x85e   : > { %v1924_v61 = vadd.f32 1e-05, %v1922_v59  ;;  %v1923_v62 = vmul.f32 0.03125, %v1921_v60 }
 0x860   : > { %3921 = vrsqrt.f32 %v1924_v61  ;;  %v1925_v63 = vadd.f32 1e-05, %v1923_v62 }
 0x862   : > { %3923 = vrsqrt.f32 %v1925_v63  ;;  %v3493_v63 = vld [vmem:[%s5271_s29] ss:$0 sm:$0xff] }
 0x86a   : > { %v3922_v1 = vpop.eup %3921 }
 0x86b   : > { %v1928_v3 = vmul.f32 %v3922_v1, %v1912_v47  ;;  %v3897_v47 = vld [vmem:[%s5118_s5 + $0x10] sm:$0xff]  }
 0x86c   : > { %v3924_v4 = vpop.eup %3923 }
 0x86d   : > { %v1936_v5 = vmul.f32 %v3480_v2, %v1928_v3  ;;  %v1929_v6 = vmul.f32 %v3924_v4, %v1913_v49  ;;  %v3899_v49 = vld [vmem:[%s5118_s5 + $0x18] sm:$0xff]   ;;  %s5490_s5 = sld [smem:[#allocation48_spill]]  ;;  %v3901_v4 = vld [vmem:[%s5123_s1 + $0x10] sm:$0xff]  }
 0x86f   : > { %v1937_v8 = vmul.f32 %v3480_v2, %v1929_v6  ;;  %v1944_v9 = vadd.f32 %v3481_v7, %v1936_v5  ;;  %v3902_v6 = vld [vmem:[%s5123_s1 + $0x18] sm:$0xff]  }
 0x871   : > { %v1945_v10 = vadd.f32 %v3481_v7, %v1937_v8 }
 0x873   : > { %v1946_v11 = vpack.c.bf16 %v1945_v10, %v1944_v9  ;;  %s5264_s22 = scalar_lea.vmem %s5490_s5, %s5175_s12 }
 0x874   : > { %v3492_v58 = vld [vmem:[%s5264_s22] ss:$0 sm:$0xff] }
 0x875   : > { %3718 = vmatmul.mubr.msk.bf16.vlgmr.msra.gmra.mrb[16].mxu1 %vm1346_vm1, %v1946_v11 }
 0x876   : > { %3737 = vmatprep.mubr.msk.bf16.mxu1 %vm4387_vm0, %v4386_v0  ;;  %3734 = vmatpush3.bf16.msra.mxu1 %v3897_v47 }
 0x877   : > { %3735 = vmatprep.subr.bf16.mxu1 %v4386_v0 }
 0x87a   : > { %3736 = vmatpush3.bf16.msra.mxu1 %v3899_v49 }
 0x87b   : > { %3741 = vmatprep.subr.bf16.mxu1 %v4386_v0 }
 0x948   : > { %v2002_v17 = vpop.f32.mrb[16].mxu1 }
 0x949   : > { %v2003_v18 = vadd.f32 %v3482_v16, %v2002_v17  ;;  %v3719_v19 = vpop.f32.mrb[17].mxu1  ;;  %v3536_v17 = vld [vmem:[%s1035_s16 + $0x1] ss:$0 sm:$0xff] }
 0x94a   : > { %v2005_v20 = vpop.f32.mrb[18].mxu1 }
 0x94b   : > { %v2006_v21 = vadd.f32 %v3482_v16, %v2005_v20  ;;  %v3720_v22 = vpop.f32.mrb[19].mxu1  ;;  %v2009_v23 = vmax.f32 %v2003_v18, 0.0 }
 0x94d   : > { %v2010_v24 = vmax.f32 %v2006_v21, 0.0  ;;  %v3540_v21 = vld [vmem:[%s1053_s15 + $0x1] ss:$0 sm:$0xff]  ;;  %s5492_s15 = sld [smem:[#allocation51_spill]] }
 0x94f   : > { %v2011_v25 = vpack.c.bf16 %v2010_v24, %v2009_v23 }
 0x951   : > { %3730 = vmatmul.mubr.msk.bf16.vlgmr.msra.gmra.mrb[20].mxu0 %vm2042_vm4, %v2011_v25 }
 0x952   : > { %3753 = vmatprep.mubr.msk.bf16.mxu0 %vm4387_vm0, %v4386_v0  ;;  %3750 = vmatpush3.bf16.msra.mxu0 %v3898_v48 }
 0x953   : > { %3751 = vmatprep.subr.bf16.mxu0 %v4386_v0 }
 0x956   : > { %3752 = vmatpush3.bf16.msra.mxu0 %v3900_v50 }
 0x957   : > { %3763 = vmatprep.subr.bf16.mxu0 %v4386_v0 }
 0xa24   : > { %v2080_v27 = vpop.f32.mrb[20].mxu0 }
 0xa25   : > { %v2081_v28 = vadd.f32 %v3486_v26, %v2080_v27  ;;  %v3731_v29 = vpop.f32.mrb[21].mxu0 }
 0xa26   : > { %v2083_v30 = vpop.f32.mrb[22].mxu0 }
 0xa27   : > { %v2084_v31 = vadd.f32 %v3486_v26, %v2083_v30  ;;  %v3732_v32 = vpop.f32.mrb[23].mxu0  ;;  %v2087_v33 = vadd.f32 %v2081_v28, %v1944_v9  ;;  %v3532_v26 = vld [vmem:[%s1026_s27 + $0x1] ss:$0 sm:$0xff] }
 0xa29   : > { %v2089_v34 = vsel %vm1346_vm1, %v2087_v33, 0.0  ;;  %v2088_v35 = vadd.f32 %v2084_v31, %v1945_v10 }
 0xa2a   : > { %2090 = vadd.xlane.f32.xlu0 %v2089_v34 }
 0xa2b   : > { %v2092_v36 = vsel %vm1346_vm1, %v2088_v35, 0.0 }
 0xa2c   : > { %2093 = vadd.xlane.f32.xlu1 %v2092_v36 }
 0xab7   : > { %v2091_v37 = vpop.xlane.xlu0 %2090 }
 0xab8   : > { %v2095_v38 = vmul.f32 0.03125, %v2091_v37 }
 0xab9   : > { %v2094_v39 = vpop.xlane.xlu1 %2093 }
 0xaba   : > { %v2097_v40 = vsub.f32 %v2087_v33, %v2095_v38  ;;  %v2096_v41 = vmul.f32 0.03125, %v2094_v39 }
 0xabc   : > { %v2098_v42 = vsub.f32 %v2088_v35, %v2096_v41  ;;  %v2099_v43 = vmul.f32 %v2097_v40, %v2097_v40 }
 0xabe   : > { %v2101_v44 = vsel %vm1346_vm1, %v2099_v43, 0.0  ;;  %v2100_v45 = vmul.f32 %v2098_v42, %v2098_v42 }
 0xabf   : > { %2102 = vadd.xlane.f32.xlu0 %v2101_v44 }
 0xac0   : > { %v2104_v46 = vsel %vm1346_vm1, %v2100_v45, 0.0 }
 0xac1   : > { %2105 = vadd.xlane.f32.xlu1 %v2104_v46 }
 0xb4c   : > { %v2103_v14 = vpop.xlane.xlu0 %2102 }
 0xb4d   : > { %v2107_v52 = vmul.f32 0.03125, %v2103_v14 }
 0xb4e   : > { %v2106_v15 = vpop.xlane.xlu1 %2105 }
 0xb4f   : > { %v2109_v54 = vadd.f32 1e-05, %v2107_v52  ;;  %v2108_v55 = vmul.f32 0.03125, %v2106_v15 }
 0xb51   : > { %3925 = vrsqrt.f32 %v2109_v54  ;;  %v2110_v56 = vadd.f32 1e-05, %v2108_v55 }
 0xb53   : > { %3927 = vrsqrt.f32 %v2110_v56 }
 0xb5b   : > { %v3926_v57 = vpop.eup %3925 }
 0xb5c   : > { %v2113_v59 = vmul.f32 %v3926_v57, %v2097_v40 }
 0xb5d   : > { %v3928_v60 = vpop.eup %3927 }
 0xb5e   : > { %v2121_v61 = vmul.f32 %v3492_v58, %v2113_v59  ;;  %v2114_v62 = vmul.f32 %v3928_v60, %v2098_v42 }
 0xb60   : > { %v2122_v1 = vmul.f32 %v3492_v58, %v2114_v62  ;;  %v5274_v2 = vadd.f32 %v3493_v63, %v2121_v61 }
 0xb62   : > { %v5276_v3 = vadd.f32 %v3493_v63, %v2122_v1 }
 0xb64   : > { %v2185_v5 = vpack.c.bf16 %v5276_v3, %v5274_v2 }
 0xb66   : > { %3738 = vmatmul.mubr.msk.bf16.vlgmr.msra.gmra.mrb[20].mxu1 %vm1346_vm1, %v2185_v5  ;;  %3754 = vmatmul.mubr.msk.bf16.vlgmr.msra.gmra.mrb[24].mxu0 %vm1346_vm1, %v2185_v5 }
 0xb67   : > { %3742 = vmatpush3.bf16.msra.mxu1 %v3901_v4  ;;  %3745 = vmatprep.mubr.msk.bf16.mxu1 %vm4387_vm0, %v4386_v0  ;;  %v3903_v4 = vld [vmem:[%s5061_s8 + $0x10] sm:$0xff]  }
 0xb68   : > { %3743 = vmatprep.subr.bf16.mxu1 %v4386_v0  ;;  %3765 = vmatprep.mubr.msk.bf16.mxu0 %vm4387_vm0, %v4386_v0 }
 0xb6b   : > { %3744 = vmatpush3.bf16.msra.mxu1 %v3902_v6 }
 0xb6c   : > { %3757 = vmatprep.subr.bf16.mxu1 %v4386_v0 }
 0xb6e   : > { %3746 = vmatmul.mubr.msk.bf16.vlgmr.msra.gmra.mrb[24].mxu1 %vm1346_vm1, %v2185_v5 }
 0xb6f   : > { %3759 = vmatprep.mubr.msk.bf16.mxu1 %vm4387_vm0, %v4386_v0 }
 0xc39   : > { %v2241_v7 = vpop.f32.mrb[20].mxu1  ;;  %v2359_v8 = vpop.f32.mrb[24].mxu0 }
 0xc3a   : > { %v3739_v9 = vpop.f32.mrb[21].mxu1  ;;  %v3755_v10 = vpop.f32.mrb[25].mxu0  ;;  %v2360_v27 = vadd.f32 %v3540_v21, %v2359_v8  ;;  %v2242_v30 = vadd.f32 %v3532_v26, %v2241_v7  ;;  %v3904_v8 = vld [vmem:[%s5061_s8 + $0x18] sm:$0xff]   ;;  %s1316_s8 = scalar_lea.vmem %s5492_s15, %s5175_s12 }
 0xc3b   : > { %v2244_v11 = vpop.f32.mrb[22].mxu1  ;;  %v2362_v12 = vpop.f32.mrb[26].mxu0 }
 0xc3c   : > { %v3740_v13 = vpop.f32.mrb[23].mxu1  ;;  %v3756_v16 = vpop.f32.mrb[27].mxu0  ;;  %v2363_v31 = vadd.f32 %v3540_v21, %v2362_v12  ;;  %v2370_v33 = vpack.c.bf16 %v2360_v27, %v2360_v27  ;;  %v2245_v34 = vadd.f32 %v3532_v26, %v2244_v11  ;;  %v2366_v35 = vpack.c.bf16 %v2242_v30, %v2242_v30 }
 0xc3e   : > { %v2371_v36 = vpack.c.bf16 %v2363_v31, %v2363_v31  ;;  %v2492_v37 = vsel %vm1748_vm2, %v2370_v33, 0  ;;  %v2367_v38 = vpack.c.bf16 %v2245_v34, %v2245_v34 }
 0xc40   : > { %v2538_v39 = vsel %vm1748_vm2, %v2371_v36, 0 }
 0xc41   : > { %v2300_v18 = vpop.f32.mrb[24].mxu1 }
 0xc42   : > { %v2301_v19 = vadd.f32 %v3536_v17, %v2300_v18  ;;  %v3747_v20 = vpop.f32.mrb[25].mxu1 }
 0xc43   : > { %v2303_v22 = vpop.f32.mrb[26].mxu1  ;;  %v3548_v20 = vld [vmem:[%s1071_s23 + $0x1] ss:$0 sm:$0xff] }
 0xc44   : > { %v2368_v23 = vpack.c.bf16 %v2301_v19, %v2301_v19  ;;  %v2304_v24 = vadd.f32 %v3536_v17, %v2303_v22  ;;  %v3748_v25 = vpop.f32.mrb[27].mxu1 }
 0xc46   : > { %v2376_v28 = vsel %vm1346_vm1, %v2368_v23, 0  ;;  %v2369_v29 = vpack.c.bf16 %v2304_v24, %v2304_v24 }
 0xc47   : > { %3758 = vmatpush3.bf16.xpose.msra.mxu1 %v2376_v28 }
 0xc48   : > { %v2422_v32 = vsel %vm1346_vm1, %v2369_v29, 0  ;;  %3769 = vmatprep.subr.bf16.mxu1 %v4386_v0 }
 0xc49   : > { %3764 = vmatpush3.bf16.xpose.msra.mxu0 %v2422_v32 }
 0xc4a   : > { %3775 = vmatprep.subr.bf16.mxu0 %v4386_v0 }
 0xc4e   : > { %3760 = vmatmul.mubr.msk.bf16.vlgmr.msra.gmra.mrb[28].mxu1 %vm1346_vm1, %v2366_v35 }
 0xc4f   : > { %3770 = vmatpush3.bf16.msra.mxu1 %v2492_v37  ;;  %3771 = vmatprep.mubr.msk.bf16.mxu1 %vm4387_vm0, %v4386_v0 }
 0xc50   : > { %3766 = vmatmul.mubr.msk.bf16.vlgmr.msra.gmra.mrb[28].mxu0 %vm1346_vm1, %v2367_v38  ;;  %3781 = vmatprep.subr.bf16.mxu1 %v4386_v0 }
 0xc51   : > { %3776 = vmatpush3.bf16.msra.mxu0 %v2538_v39  ;;  %3777 = vmatprep.mubr.msk.bf16.mxu0 %vm4387_vm0, %v4386_v0  ;;  %v3905_v39 = vld [vmem:[%s5069_s3 + $0x10] sm:$0xff]  }
 0xc52   : > { %3789 = vmatprep.subr.bf16.mxu0 %v4386_v0 }
 0xd21   : > { %v2412_v40 = vpop.f32.mrb[28].mxu1 }
 0xd22   : > { %v2413_v41 = vadd.f32 %v5181_v51, %v2412_v40  ;;  %v3761_v42 = vpop.f32.mrb[29].mxu1  ;;  %v3906_v40 = vld [vmem:[%s5069_s3 + $0x18] sm:$0xff]  }
 0xd23   : > { %v2415_v43 = vpop.f32.mrb[30].mxu1  ;;  %v2458_v44 = vpop.f32.mrb[28].mxu0  ;;  %v3908_v42 = vld [vmem:[%s5108_s19 + $0x28] sm:$0xff]  }
 0xd24   : > { %v2459_v45 = vadd.f32 %v5183_v53, %v2458_v44  ;;  %v3762_v46 = vpop.f32.mrb[31].mxu1  ;;  %v3767_v47 = vpop.f32.mrb[29].mxu0  ;;  %v2464_v48 = vsel %vm1720_vm3, %v2413_v41, -inf }
 0xd25   : > { %2465 = vmax.xlane.f32.xlu0 %v2464_v48  ;;  %v2461_v49 = vpop.f32.mrb[30].mxu0 }
 0xd26   : > { %v3768_v50 = vpop.f32.mrb[31].mxu0  ;;  %v2467_v14 = vsel %vm1720_vm3, %v2459_v45, -inf }
 0xd27   : > { %2468 = vmax.xlane.f32.xlu1 %v2467_v14  ;;  %v3552_v50 = vld [vmem:[%s5224_s6 + $0x1] ss:$0 sm:$0xff] }
 0xdb2   : > { %v2466_v52 = vpop.xlane.xlu0 %2465 }
 0xdb3   : > { %v2470_v15 = vsub.f32 %v2413_v41, %v2466_v52  ;;  %v3907_v41 = vld [vmem:[%s5108_s19 + $0x20] sm:$0xff]  }
 0xdb4   : > { %v2469_v54 = vpop.xlane.xlu1 %2468 }
 0xdb5   : > { %v2472_v55 = vmul.f32 1.442695, %v2470_v15  ;;  %v2471_v51 = vsub.f32 %v2459_v45, %v2469_v54 }
 0xdb7   : > { %3929 = vpow2.f32 %v2472_v55  ;;  %v2474_v56 = vmul.f32 1.442695, %v2471_v51  ;;  %v3553_v55 = vld [vmem:[%s5231_s7 + $0x1] ss:$0 sm:$0xff] }
 0xdb9   : > { %3931 = vpow2.f32 %v2474_v56 }
 0xdc1   : > { %v3930_v53 = vpop.eup %3929 }
 0xdc2   : > { %v2476_v57 = vsel %vm1720_vm3, %v3930_v53, 0.0 }
 0xdc3   : > { %v3932_v58 = vpop.eup %3931  ;;  %2477 = vadd.xlane.f32.xlu0 %v2476_v57 }
 0xdc4   : > { %v2479_v59 = vsel %vm1720_vm3, %v3932_v58, 0.0 }
 0xdc5   : > { %2480 = vadd.xlane.f32.xlu1 %v2479_v59  ;;  %v3910_v59 = vld [vmem:[%s5108_s19 + $0x38] sm:$0xff]  }
 0xe50   : > { %v2478_v60 = vpop.xlane.xlu0 %2477 }
 0xe51   : > { %3933 = vrcp.f32 %v2478_v60  ;;  %v3554_v60 = vld [vmem:[%s1089_s25 + $0x1] ss:$0 sm:$0xff] }
 0xe52   : > { %v2481_v61 = vpop.xlane.xlu1 %2480 }
 0xe53   : > { %3935 = vrcp.f32 %v2481_v61 }
 0xe5b   : > { %v3934_v62 = vpop.eup %3933 }
 0xe5c   : > { %v2484_v63 = vmul.f32 %v3934_v62, %v3930_v53 }
 0xe5d   : > { %v3936_v1 = vpop.eup %3935 }
 0xe5e   : > { %v2485_v5 = vmul.f32 %v3936_v1, %v3932_v58  ;;  %v2486_v6 = vpack.c.bf16 %v2484_v63, %v2484_v63  ;;  %v3909_v58 = vld [vmem:[%s5108_s19 + $0x30] sm:$0xff]  }
 0xe60   : > { %3772 = vmatmul.mubr.msk.bf16.vlgmr.msra.gmra.mrb[32].mxu1 %vm1720_vm3, %v2486_v6  ;;  %v2487_v7 = vpack.c.bf16 %v2485_v5, %v2485_v5 }
 0xe61   : > { %3782 = vmatpush3.bf16.msra.mxu1 %v3903_v4  ;;  %3785 = vmatprep.mubr.msk.bf16.mxu1 %vm4387_vm0, %v4386_v0 }
 0xe62   : > { %3778 = vmatmul.mubr.msk.bf16.vlgmr.msra.gmra.mrb[32].mxu0 %vm1720_vm3, %v2487_v7  ;;  %3783 = vmatprep.subr.bf16.mxu1 %v4386_v0 }
 0xe63   : > { %3793 = vmatprep.mubr.msk.bf16.mxu0 %vm4387_vm0, %v4386_v0  ;;  %3790 = vmatpush3.bf16.msra.mxu0 %v3905_v39  ;;  %v3564_v39 = vld [vmem:[%s5264_s22 + $0x1] ss:$0 sm:$0xff] }
 0xe64   : > { %3791 = vmatprep.subr.bf16.mxu0 %v4386_v0 }
 0xe65   : > { %3784 = vmatpush3.bf16.msra.mxu1 %v3904_v8 }
 0xe66   : > { %3797 = vmatprep.subr.bf16.mxu1 %v4386_v0 }
 0xe67   : > { %3792 = vmatpush3.bf16.msra.mxu0 %v3906_v40 }
 0xe68   : > { %3809 = vmatprep.subr.bf16.mxu0 %v4386_v0 }
 0xf33   : > { %v2528_v9 = vpop.f32.mrb[32].mxu1 }
 0xf34   : > { %v3773_v10 = vpop.f32.mrb[33].mxu1 }
 0xf35   : > { %v2531_v11 = vpop.f32.mrb[34].mxu1  ;;  %v2574_v12 = vpop.f32.mrb[32].mxu0 }
 0xf36   : > { %v2580_v13 = vpack.c.bf16 %v2574_v12, %v2528_v9  ;;  %v3774_v16 = vpop.f32.mrb[35].mxu1  ;;  %v3779_v17 = vpop.f32.mrb[33].mxu0  ;;  %v3558_v9 = vld [vmem:[%s1098_s18 + $0x1] ss:$0 sm:$0xff] }
 0xf37   : > { %v2577_v18 = vpop.f32.mrb[34].mxu0 }
 0xf38   : > { %v3780_v19 = vpop.f32.mrb[35].mxu0  ;;  %3786 = vmatmul.mubr.msk.bf16.vlgmr.msra.gmra.mrb[36].mxu1 %vm1346_vm1, %v2580_v13 }
 0xf39   : > { %3805 = vmatprep.mubr.msk.bf16.mxu1 %vm4387_vm0, %v4386_v0  ;;  %3798 = vmatpush3.bf16.msra.mxu1 %v3907_v41 }
 0xf3a   : > { %3799 = vmatprep.subr.bf16.mxu1 %v4386_v0 }
 0xf3d   : > { %3800 = vmatpush3.bf16.msra.mxu1 %v3908_v42  ;;  %v3565_v42 = vld [vmem:[%s5271_s29 + $0x1] ss:$0 sm:$0xff] }
 0xf3e   : > { %3801 = vmatprep.subr.bf16.mxu1 %v4386_v0 }
 0xf41   : > { %3802 = vmatpush3.bf16.msra.mxu1 %v3909_v58 }
 0xf42   : > { %3803 = vmatprep.subr.bf16.mxu1 %v4386_v0 }
 0xf45   : > { %3804 = vmatpush3.bf16.msra.mxu1 %v3910_v59 }
0x100b   : > { %v2636_v21 = vpop.f32.mrb[36].mxu1 }
0x100c   : > { %v2637_v22 = vadd.f32 %v3548_v20, %v2636_v21  ;;  %v3787_v23 = vpop.f32.mrb[37].mxu1 }
0x100d   : > { %v2639_v24 = vpop.f32.mrb[38].mxu1 }
0x100e   : > { %v2640_v25 = vadd.f32 %v3548_v20, %v2639_v24  ;;  %v3788_v26 = vpop.f32.mrb[39].mxu1  ;;  %v2643_v27 = vadd.f32 %v2637_v22, %v5274_v2 }
0x1010   : > { %v2645_v28 = vsel %vm1346_vm1, %v2643_v27, 0.0  ;;  %v2644_v29 = vadd.f32 %v2640_v25, %v5276_v3 }
0x1011   : > { %2646 = vadd.xlane.f32.xlu0 %v2645_v28 }
0x1012   : > { %v2648_v30 = vsel %vm1346_vm1, %v2644_v29, 0.0 }
0x1013   : > { %2649 = vadd.xlane.f32.xlu1 %v2648_v30 }
0x109e   : > { %v2647_v31 = vpop.xlane.xlu0 %2646 }
0x109f   : > { %v2651_v32 = vmul.f32 0.03125, %v2647_v31 }
0x10a0   : > { %v2650_v33 = vpop.xlane.xlu1 %2649 }
0x10a1   : > { %v2653_v34 = vsub.f32 %v2643_v27, %v2651_v32  ;;  %v2652_v35 = vmul.f32 0.03125, %v2650_v33  ;;  %v3911_v32 = vld [vmem:[%s5081_s9] sm:$0xff]   ;;  %v3912_v33 = vld [vmem:[%s5081_s9 + $0x8] sm:$0xff]  }
0x10a3   : > { %v2654_v36 = vsub.f32 %v2644_v29, %v2652_v35  ;;  %v2655_v37 = vmul.f32 %v2653_v34, %v2653_v34 }
0x10a5   : > { %v2657_v2 = vsel %vm1346_vm1, %v2655_v37, 0.0  ;;  %v2656_v38 = vmul.f32 %v2654_v36, %v2654_v36 }
0x10a6   : > { %2658 = vadd.xlane.f32.xlu0 %v2657_v2 }
0x10a7   : > { %v2660_v3 = vsel %vm1346_vm1, %v2656_v38, 0.0 }
0x10a8   : > { %2661 = vadd.xlane.f32.xlu1 %v2660_v3 }
0x1133   : > { %v2659_v43 = vpop.xlane.xlu0 %2658 }
0x1134   : > { %v2663_v44 = vmul.f32 0.03125, %v2659_v43 }
0x1135   : > { %v2662_v45 = vpop.xlane.xlu1 %2661 }
0x1136   : > { %v2665_v46 = vadd.f32 1e-05, %v2663_v44  ;;  %v2664_v47 = vmul.f32 0.03125, %v2662_v45 }
0x1138   : > { %3937 = vrsqrt.f32 %v2665_v46  ;;  %v2666_v48 = vadd.f32 1e-05, %v2664_v47 }
0x113a   : > { %3939 = vrsqrt.f32 %v2666_v48 }
0x1142   : > { %v3938_v49 = vpop.eup %3937 }
0x1143   : > { %v2669_v14 = vmul.f32 %v3938_v49, %v2653_v34 }
0x1144   : > { %v3940_v52 = vpop.eup %3939 }
0x1145   : > { %v2677_v15 = vmul.f32 %v3552_v50, %v2669_v14  ;;  %v2670_v54 = vmul.f32 %v3940_v52, %v2654_v36 }
0x1147   : > { %v2678_v51 = vmul.f32 %v3552_v50, %v2670_v54  ;;  %v2685_v56 = vadd.f32 %v3553_v55, %v2677_v15 }
0x1149   : > { %v2686_v53 = vadd.f32 %v3553_v55, %v2678_v51 }
0x114b   : > { %v2687_v57 = vpack.c.bf16 %v2686_v53, %v2685_v56 }
0x114d   : > { %3794 = vmatmul.mubr.msk.bf16.vlgmr.msra.gmra.mrb[36].mxu0 %vm1346_vm1, %v2687_v57 }
0x114e   : > { %3813 = vmatprep.mubr.msk.bf16.mxu0 %vm4387_vm0, %v4386_v0  ;;  %3810 = vmatpush3.bf16.msra.mxu0 %v3911_v32 }
0x114f   : > { %3811 = vmatprep.subr.bf16.mxu0 %v4386_v0 }
0x1152   : > { %3812 = vmatpush3.bf16.msra.mxu0 %v3912_v33 }
0x1220   : > { %v2743_v61 = vpop.f32.mrb[36].mxu0 }
0x1221   : > { %v2744_v62 = vadd.f32 %v3554_v60, %v2743_v61  ;;  %v3795_v63 = vpop.f32.mrb[37].mxu0 }
0x1222   : > { %v2746_v1 = vpop.f32.mrb[38].mxu0 }
0x1223   : > { %v2747_v4 = vadd.f32 %v3554_v60, %v2746_v1  ;;  %v3796_v5 = vpop.f32.mrb[39].mxu0  ;;  %v2750_v6 = vmax.f32 %v2744_v62, 0.0 }
0x1225   : > { %v2751_v7 = vmax.f32 %v2747_v4, 0.0 }
0x1227   : > { %v2752_v8 = vpack.c.bf16 %v2751_v7, %v2750_v6  ;;  %v3566_v6 = vld [vmem:[%s1115_s11] ss:$0 sm:$0xff] }
0x1229   : > { %3806 = vmatmul.mubr.msk.bf16.vlgmr.msra.gmra.mrb[40].mxu1 %vm2042_vm4, %v2752_v8 }
0x12fc   : > { %v2820_v10 = vpop.f32.mrb[40].mxu1 }
0x12fd   : > { %v2821_v11 = vadd.f32 %v3558_v9, %v2820_v10  ;;  %v3807_v12 = vpop.f32.mrb[41].mxu1 }
0x12fe   : > { %v2823_v13 = vpop.f32.mrb[42].mxu1 }
0x12ff   : > { %v2824_v16 = vadd.f32 %v3558_v9, %v2823_v13  ;;  %v3808_v17 = vpop.f32.mrb[43].mxu1  ;;  %v2827_v18 = vadd.f32 %v2821_v11, %v2685_v56 }
0x1301   : > { %v2829_v19 = vsel %vm1346_vm1, %v2827_v18, 0.0  ;;  %v2828_v20 = vadd.f32 %v2824_v16, %v2686_v53 }
0x1302   : > { %2830 = vadd.xlane.f32.xlu0 %v2829_v19 }
0x1303   : > { %v2832_v21 = vsel %vm1346_vm1, %v2828_v20, 0.0 }
0x1304   : > { %2833 = vadd.xlane.f32.xlu1 %v2832_v21 }
0x138f   : > { %v2831_v22 = vpop.xlane.xlu0 %2830 }
0x1390   : > { %v2835_v23 = vmul.f32 0.03125, %v2831_v22 }
0x1391   : > { %v2834_v24 = vpop.xlane.xlu1 %2833 }
0x1392   : > { %v2837_v25 = vsub.f32 %v2827_v18, %v2835_v23  ;;  %v2836_v26 = vmul.f32 0.03125, %v2834_v24 }
0x1394   : > { %v2838_v27 = vsub.f32 %v2828_v20, %v2836_v26  ;;  %v2839_v28 = vmul.f32 %v2837_v25, %v2837_v25 }
0x1396   : > { %v2841_v29 = vsel %vm1346_vm1, %v2839_v28, 0.0  ;;  %v2840_v30 = vmul.f32 %v2838_v27, %v2838_v27 }
0x1397   : > { %2842 = vadd.xlane.f32.xlu0 %v2841_v29 }
0x1398   : > { %v2844_v31 = vsel %vm1346_vm1, %v2840_v30, 0.0 }
0x1399   : > { %2845 = vadd.xlane.f32.xlu1 %v2844_v31 }
0x1424   : > { %v2843_v34 = vpop.xlane.xlu0 %2842 }
0x1425   : > { %v2847_v35 = vmul.f32 0.03125, %v2843_v34 }
0x1426   : > { %v2846_v36 = vpop.xlane.xlu1 %2845 }
0x1427   : > { %v2849_v37 = vadd.f32 1e-05, %v2847_v35  ;;  %v2848_v2 = vmul.f32 0.03125, %v2846_v36 }
0x1429   : > { %3941 = vrsqrt.f32 %v2849_v37  ;;  %v2850_v38 = vadd.f32 1e-05, %v2848_v2 }
0x142b   : > { %3943 = vrsqrt.f32 %v2850_v38 }
0x1433   : > { %v3942_v3 = vpop.eup %3941 }
0x1434   : > { %v2853_v40 = vmul.f32 %v3942_v3, %v2837_v25 }
0x1435   : > { %v3944_v41 = vpop.eup %3943 }
0x1436   : > { %v2861_v43 = vmul.f32 %v3564_v39, %v2853_v40  ;;  %v2854_v44 = vmul.f32 %v3944_v41, %v2838_v27 }
0x1438   : > { %v2869_v45 = vadd.f32 %v3565_v42, %v2861_v43  ;;  %v2862_v46 = vmul.f32 %v3564_v39, %v2854_v44 }
0x143a   : > { %v2871_v0 = vsel %vm1346_vm1, %v2869_v45, 0.0  ;;  %v2870_v47 = vadd.f32 %v3565_v42, %v2862_v46 }
0x143b   : > { %v2872_v48 = vrot.slane %v2871_v0, 4 }
0x143c   : > { %v2878_v49 = vsel %vm1346_vm1, %v2870_v47, 0.0 }
0x143d   : > { %v2873_v50 = vadd.f32 %v2872_v48, %v2871_v0  ;;  %v2879_v14 = vrot.slane %v2878_v49, 4 }
0x143f   : > { %v2874_v52 = vrot.slane %v2873_v50, 2  ;;  %v2880_v15 = vadd.f32 %v2879_v14, %v2878_v49 }
0x1441   : > { %v2881_v54 = vrot.slane %v2880_v15, 2  ;;  %v2875_v55 = vadd.f32 %v2874_v52, %v2873_v50 }
0x1443   : > { %v2876_v51 = vrot.slane %v2875_v55, 1  ;;  %v2882_v56 = vadd.f32 %v2881_v54, %v2880_v15 }
0x1445   : > { %v2877_v53 = vadd.f32 %v2876_v51, %v2875_v55  ;;  %v2883_v57 = vrot.slane %v2882_v56, 1 }
0x1447   : > { %v2884_v58 = vadd.f32 %v2883_v57, %v2882_v56  ;;  %v2886_v59 = vmul.f32 0.125, %v2877_v53 }
0x1449   : > { %v2887_v60 = vmul.f32 0.125, %v2884_v58  ;;  %v2888_v61 = vpack.c.bf16 %v2886_v59, %v2886_v59 }
0x144b   : > { %v2889_v62 = vpack.c.bf16 %v2887_v60, %v2887_v60  ;;  %v2903_v63 = vunpack.c.l.b16 %v2888_v61 }
0x144d   : > { %v2904_v1 = vunpack.c.l.b16 %v2889_v62 }
0x144f   : > { %v2906_v4 = vsel %vm2905_vm5, %v2904_v1, %v2903_v63 }
0x1450   : > { %v2907_v5 = vpack.c.b16 %v2906_v4, %v2906_v4 }
0x1452   : > { %3814 = vmatmul.mubr.msk.bf16.vlgmr.msra.gmra.mrb[40].mxu0 %vm1346_vm1, %v2907_v5 }
0x1525   : > { %v2957_v7 = vpop.f32.mrb[40].mxu0 }
0x1526   : > { %v2958_v8 = vadd.f32 %v3566_v6, %v2957_v7  ;;  %v3815_v9 = vpop.f32.mrb[41].mxu0 }
0x1527   : > { %v2960_v10 = vpop.f32.mrb[42].mxu0 }
0x1528   : > { %2964 = vst.msk [vmem:[%s1316_s8] sm:$0x3] %vm2963_vm6, %v2958_v8  ;;  %v3816_v11 = vpop.f32.mrb[43].mxu0 }
0x1529 PF: > { %s5493_s30 = sld [smem:[#allocation30_spill]]  ;;  %s5494_s23 = sld [smem:[#allocation29_spill]] }
0x152a   : > { %s5495_s29 = sld [smem:[#allocation31_spill]]  ;;  %s5496_s3 = smov %s4359_s28 }
0x152f   : > { %p50_p6 = scmp.ge.s32.totalorder %s5493_s30, 4   ;;  %s5497_s28 = smov %s5494_s23 }
0x1531   :  { %52 = sbr.rel (!%p50_p6) target bundleno = 36 (0x24), region = 335 }
0x1538   :  { %2984 = vsyncpa [#allocation3], 1 }
0x1539   :  { %2986 = vsyncpa [#allocation3 + $0x1], 1 }
0x153a   :  { %2987 = vsyncpa [#allocation5], 1 }
0x153b   :  { %2989 = vsyncpa [#allocation5 + $0x1], 1 }
0x153c   :  { %2990 = vsyncpa [#allocation8], 1 }
0x153d   :  { %2992 = vsyncpa [#allocation8 + $0x1], 1 }
0x153e   :  { %2993 = vsyncpa [#allocation11], 1 }
0x153f   :  { %2995 = vsyncpa [#allocation11 + $0x1], 1 }
0x1540   :  { %2996 = vsyncpa [#allocation14], 1 }
0x1541   :  { %2998 = vsyncpa [#allocation14 + $0x1], 1 }
0x1542   :  { %2999 = vsyncpa [#allocation17], 1 }
0x1543   :  { %3001 = vsyncpa [#allocation17 + $0x1], 1 }
0x1544   :  { %3002 = vsyncpa [#allocation20], 1 }
0x1545   :  { %3004 = vsyncpa [#allocation20 + $0x1], 1 }

</bundles_post_ra>
